<compile_context>
chip_gen: v7x
topology: tpu7x:2x2x1
jax: 0.10.0
libtpu: 0.0.40
codegen_flags: <defaults>
</compile_context>

<pallas_src>
import functools

import jax
import jax.numpy as jnp
from jax import lax
from jax.experimental import pallas as pl
from jax.experimental.pallas import tpu as pltpu


# ----------------------------------------------------------------------------
# Pallas kernel
# ----------------------------------------------------------------------------
def _unitary_gine_kernel(
    inv_ref,      # [T]      SMEM f32: Taylor coefficients 1/(k+1)
    x_ref,        # [N, D]   real input node features (f32)
    w_lin_t_ref,  # [D, D]   lin.weight^T (real part of the orthogonal complex weight)
    g_ref,        # [E, N]   one-hot of edge source (bf16, exact 0/1)
    s_ref,        # [N, E]   one-hot^T of edge target (bf16, exact 0/1)
    ew_ref,       # [E, 1]   gcn_norm edge weights (f32, applied on the VPU)
    ea_ref,       # [E, 2D]  edge attributes, pre-padded [ea_real | 0] in the wrapper
    w1_t_ref,     # [2D, 2D] nn[0].weight^T
    b1_ref,       # [1, 2D]
    w2_t_ref,     # [2D, 2D] nn[2].weight^T
    b2_ref,       # [1, 2D]
    out_ref,      # [N, 2D]  (real | imag); view_as_complex applied in the wrapper
    *,
    T: int,
    D: int,
):
    bf16 = jnp.bfloat16

    def mxu(a, b):
        # single-pass bf16 MXU matmul with f32 accumulation (hot-loop gather/scatter;
        # G / S are exact 0/1 in bf16).
        return jnp.dot(a.astype(bf16), b.astype(bf16),
                       preferred_element_type=jnp.float32)

    def mxu_exact(a, b):
        # the 3 tiny out-of-loop matmuls (feature lin + 2-layer MLP) keep full precision;
        # their MXU cost is negligible next to the 2*T loop matmuls.
        return jnp.dot(a, b, precision=lax.Precision.HIGHEST,
                       preferred_element_type=jnp.float32)

    x_in = x_ref[...]                                   # [N, D] real input (residual)
    G = g_ref[...]                                      # [E, N] bf16
    S = s_ref[...]                                      # [N, E] bf16
    ea_pad = ea_ref[...]                                # [E, 2D] f32, [ea | 0]
    ea_r = ea_pad[:, :D]                                # real-plane edge attrs
    E = G.shape[0]
    N = x_in.shape[0]

    # Hoisted broadcasts (JAX does not CSE broadcast_in_dim inside a loop).
    ew2 = jnp.broadcast_to(ew_ref[...], (E, 2 * D))     # f32 gcn_norm weights, 2 planes
    ew1 = ew2[:, :D]
    lane = lax.broadcasted_iota(jnp.int32, (N, 2 * D), 1)
    sign = jnp.where(lane < D, jnp.float32(-1.0), jnp.float32(1.0))  # [-1]*D ++ [+1]*D

    # --- feature lin (complex weight has zero imag part; conv bias is zero-init) ---
    feat_r = mxu_exact(x_in, w_lin_t_ref[...])          # [N, D]

    # --- Taylor step k = 0 (imag plane of x_k identically zero -> D-wide matmuls) ---
    xj0 = mxu(G, feat_r)                                # gather x_j.real     [E, D]
    m0 = jnp.maximum((xj0 + ea_r) * ew1, 0.0)           # relu((x_j+ea)*w)    [E, D]
    agg0 = mxu(S, m0)                                   # scatter-add         [N, D]
    # x_k after k=0 is 1j*agg0 = [0 | agg0]; residual x_in folded into the real half.
    acc = jnp.concatenate([feat_r + x_in, agg0], axis=-1)   # [N, 2D] = [real | imag]

    if T >= 2:
        # --- Taylor step k = 1 (real plane zero -> gather the imag plane only) ---
        xj1 = mxu(G, agg0)                              # gather x_j.imag     [E, D]
        m1 = jnp.maximum(jnp.concatenate([ea_r, xj1], axis=-1) * ew2, 0.0)   # [E, 2D]
        agg1 = mxu(S, m1)                               # [N, 2D]
        # x_k = 1j*agg/2: lane-half swap on the XLU + hoisted sign mask + 1/2 scalar.
        xk = pltpu.roll(agg1, shift=D, axis=1) * sign * inv_ref[1]
        acc = acc + xk

        if T > 2:
            # fori_loop bounds live ranges / code size for large T; 1/(k+1) comes from
            # the SMEM table (no scalar float division in the loop).
            def body(k, carry):
                xk, acc = carry
                xj = mxu(G, xk)                                     # [E, 2D]
                m = jnp.maximum((xj + ea_pad) * ew2, 0.0)           # [E, 2D]
                agg = mxu(S, m)                                     # [N, 2D]
                xk = pltpu.roll(agg, shift=D, axis=1) * sign * inv_ref[k]
                return xk, acc + xk

            xk, acc = lax.fori_loop(2, T, body, (xk, acc))

    # --- cat([real, imag]) is already the layout of acc -> Linear -> ReLU -> Linear ---
    h = jnp.maximum(mxu_exact(acc, w1_t_ref[...]) + b1_ref[...], 0.0)
    out_ref[...] = mxu_exact(h, w2_t_ref[...]) + b2_ref[...]


# ----------------------------------------------------------------------------
# Glue: gcn_norm (no self loops, symmetric normalization, flow=source_to_target)
# ----------------------------------------------------------------------------
def gcn_norm_weights(row, col, num_nodes):
    ones = jnp.ones((row.shape[0],), jnp.float32)
    deg = jax.ops.segment_sum(ones, col, num_segments=num_nodes)
    dinv = jnp.where(deg > 0, lax.rsqrt(jnp.maximum(deg, 1e-30)), 0.0)
    return dinv[row] * ones * dinv[col]


# ----------------------------------------------------------------------------
# Wrapper
# ----------------------------------------------------------------------------
def unitary_gine_conv_layer(x, edge_index, edge_attr, params, *, T=10):
    """Pallas implementation of UnitaryGINEConvLayer.forward (residual=True,
    global_bias unused in forward, dropout=0, return_real=False)."""
    N, Din = x.shape
    Dout = params["w_lin"].shape[0]
    assert Din == Dout, "residual connection requires dim_in == dim_out"
    assert T >= 1
    E = edge_index.shape[1]
    row, col = edge_index[0], edge_index[1]

    # gcn_norm weights stay f32 and are applied on the VPU inside the kernel; the
    # gather/scatter matrices are pure 0/1 one-hots (exact in bf16), so no weight
    # quantization compounds over the T Taylor steps.
    ew = gcn_norm_weights(row, col, N).reshape(E, 1).astype(jnp.float32)
    G = jax.nn.one_hot(row, N, dtype=jnp.bfloat16)        # [E, N]
    S = jax.nn.one_hot(col, N, dtype=jnp.bfloat16).T      # [N, E]
    # TODO(synk): for graphs beyond toy size replace the dense one-hot G/S with
    # index-driven, edge-tiled gather/scatter (scalar-prefetched row/col offsets in SMEM,
    # grid over edge tiles, VMEM node accumulator) so VMEM stays bounded on v7x
    # (64 MiB/core) and DMA overlaps compute; storing G as int8 (exact 0/1) is an interim
    # 2x VMEM saving if the dense form is kept.
    # TODO(synk): batches of small graphs should be packed block-diagonally (or given a
    # leading 'parallel' grid axis) to fill the MXU and use v7x's 2nd TensorCore; a single
    # graph's Taylor chain is inherently serial, so no parallel grid axis is added here.

    ea_pad = jnp.concatenate(
        [edge_attr.astype(jnp.float32), jnp.zeros((E, Dout), jnp.float32)], axis=-1)
    inv_tab = 1.0 / (jnp.arange(T, dtype=jnp.float32) + 1.0)          # [T] SMEM table

    # Advisory cost estimate (gather + scatter dominate).
    flops = int(
        2 * N * Din * Dout                                  # feature lin
        + 4 * E * N * Dout                                  # k=0 (D-wide gather+scatter)
        + (2 * E * N * Dout + 4 * N * E * Dout)             # k=1 (D gather, 2D scatter)
        + max(T - 2, 0) * 8 * E * N * Dout                  # k>=2 (2D gather+scatter)
        + 4 * N * (2 * Dout) ** 2                           # 2-layer MLP
    )
    operand_bytes = int(
        inv_tab.size * 4 + x.size * 4 + params["w_lin"].size * 4
        + G.size * 2 + S.size * 2 + ew.size * 4 + ea_pad.size * 4
        + params["w1"].size * 4 + params["b1"].size * 4
        + params["w2"].size * 4 + params["b2"].size * 4
        + N * 2 * Dout * 4
    )
    live_bytes = int((3 * E * 2 * Dout + 4 * N * 2 * Dout) * 4)
    # VMEM budget derived from the actual footprint plus compiler headroom; kept well
    # under v7x's 64 MiB physical VMEM. (v5e's default scoped limit is only 16 MiB, so
    # an explicit value is still supplied.)
    vmem_limit = int(min(48 << 20, max(4 * (operand_bytes + live_bytes), 16 << 20)))

    smem = pl.BlockSpec(memory_space=pltpu.MemorySpace.SMEM)
    vmem = pl.BlockSpec(memory_space=pltpu.MemorySpace.VMEM)
    h = pl.pallas_call(
        functools.partial(_unitary_gine_kernel, T=T, D=Dout),
        out_shape=jax.ShapeDtypeStruct((N, 2 * Dout), jnp.float32),
        in_specs=[smem] + [vmem] * 10,
        out_specs=vmem,
        compiler_params=pltpu.CompilerParams(vmem_limit_bytes=vmem_limit),
        cost_estimate=pl.CostEstimate(
            flops=flops, transcendentals=0, bytes_accessed=operand_bytes),
    )(
        inv_tab,
        x.astype(jnp.float32),
        params["w_lin"].T.astype(jnp.float32),
        G,
        S,
        ew,
        ea_pad,
        params["w1"].T.astype(jnp.float32),
        params["b1"].reshape(1, -1).astype(jnp.float32),
        params["w2"].T.astype(jnp.float32),
        params["b2"].reshape(1, -1).astype(jnp.float32),
    )
    # torch.view_as_complex(x.view(N, -1, 2)): interleaved (even, odd) lane pairs.
    h = h.reshape(N, Dout, 2)
    return h[..., 0] + 1j * h[..., 1]


# ----------------------------------------------------------------------------
# Pure-JAX reference (mirrors the PyTorch semantics) for a correctness check
# ----------------------------------------------------------------------------
def reference(x, edge_index, edge_attr, params, *, T=10):
    prec = lax.Precision.HIGHEST
    N = x.shape[0]
    row, col = edge_index[0], edge_index[1]
    w = gcn_norm_weights(row, col, N)

    xc = x.astype(jnp.complex64)
    wc = params["w_lin"].astype(jnp.complex64)
    feat = jnp.dot(xc, wc.T, precision=prec)      # lin(x) (+ zero complex bias)
    acc = feat
    xk = feat
    for k in range(T):
        xj = xk[row]                              # [E, Dout]
        m = (xj + edge_attr) * w[:, None]
        m = jnp.maximum(m.real, 0.0) + 1j * jnp.maximum(m.imag, 0.0)
        agg = jax.ops.segment_sum(m, col, num_segments=N)
        xk = (1j * agg) / (k + 1)
        acc = acc + xk
    acc = acc + x                                 # residual (real)
    h = jnp.concatenate([acc.real, acc.imag], axis=-1)
    h = jnp.maximum(jnp.dot(h, params["w1"].T, precision=prec) + params["b1"], 0.0)
    h = jnp.dot(h, params["w2"].T, precision=prec) + params["b2"]
    h = h.reshape(N, -1, 2)
    return h[..., 0] + 1j * h[..., 1]


# ----------------------------------------------------------------------------
if __name__ == "__main__":
    key = jax.random.PRNGKey(0)
    k_x, k_w, k_ei, k_ea, k_w1, k_b1, k_w2, k_b2 = jax.random.split(key, 8)

    N = 16          # nodes
    D = 64          # dim_in == dim_out (2*D = 128 -> lane-dense vregs and output store)
    E = 64          # edges
    T = 10

    # deterministic inputs
    x = jax.random.normal(k_x, (N, D), dtype=jnp.float32)
    edge_index = jax.random.randint(k_ei, (2, E), 0, N, dtype=jnp.int32)
    edge_attr = 0.5 * jax.random.normal(k_ea, (E, D), dtype=jnp.float32)

    # deterministic parameters (shapes follow the module's __init__)
    w_lin, _ = jnp.linalg.qr(jax.random.normal(k_w, (D, D), dtype=jnp.float32))  # orthogonal
    params = {
        "w_lin": w_lin,                                                    # ComplexGINEConv.lin.weight (real part)
        "w1": 0.1 * jax.random.normal(k_w1, (2 * D, 2 * D), jnp.float32),  # nn[0].weight
        "b1": 0.1 * jax.random.normal(k_b1, (2 * D,), jnp.float32),        # nn[0].bias
        "w2": 0.1 * jax.random.normal(k_w2, (2 * D, 2 * D), jnp.float32),  # nn[2].weight
        "b2": 0.1 * jax.random.normal(k_b2, (2 * D,), jnp.float32),        # nn[2].bias
    }
    # NOTE: ComplexGINEConv.bias and UnitaryGINEConvLayer.bias are zero-initialized (and
    # the layer-level bias is never used in forward), so they are omitted.
    # TODO(synk): ComplexDropout / ComplexActivation (self.act) are constructed but never
    # used in UnitaryGINEConvLayer.forward, so they are intentionally not implemented.

    out = unitary_gine_conv_layer(x, edge_index, edge_attr, params, T=T)
    out = jax.block_until_ready(out)

    ref = jax.block_until_ready(reference(x, edge_index, edge_attr, params, T=T))
    err = float(jnp.max(jnp.abs(out - ref)))
    assert out.shape == (N, D) and out.dtype == jnp.complex64
    # Hot-loop matmuls run single-pass bf16 on the MXU with f32 accumulation; gcn_norm
    # weights stay f32, so the tolerance only covers bf16 input rounding of messages.
    assert err < 3e-2, f"max abs err {err}"

    print("KERNEL_OK")
</pallas_src>

<mosaic_0001>
module attributes {stable_mosaic.version = 11 : i64} {
  func.func @_unitary_gine_kernel(%arg0: memref<10xf32, #tpu.memory_space<smem>>, %arg1: memref<16x64xf32, #tpu.memory_space<vmem>>, %arg2: memref<64x64xf32, #tpu.memory_space<vmem>>, %arg3: memref<64x16xbf16, #tpu.memory_space<vmem>>, %arg4: memref<16x64xbf16, #tpu.memory_space<vmem>>, %arg5: memref<64x1xf32, #tpu.memory_space<vmem>>, %arg6: memref<64x128xf32, #tpu.memory_space<vmem>>, %arg7: memref<128x128xf32, #tpu.memory_space<vmem>>, %arg8: memref<1x128xf32, #tpu.memory_space<vmem>>, %arg9: memref<128x128xf32, #tpu.memory_space<vmem>>, %arg10: memref<1x128xf32, #tpu.memory_space<vmem>>, %arg11: memref<16x128xf32, #tpu.memory_space<vmem>>) attributes {dimension_semantics = [], scalar_prefetch = 0 : i64, scratch_operands = 0 : i64, tpu.core_type = #tpu.core_type<tc>} {
    %c0 = arith.constant 0 : index
    %c0_0 = arith.constant 0 : index
    %0 = vector.load %arg1[%c0, %c0_0] : memref<16x64xf32, #tpu.memory_space<vmem>>, vector<16x64xf32>
    %c0_1 = arith.constant 0 : index
    %c0_2 = arith.constant 0 : index
    %1 = vector.load %arg3[%c0_1, %c0_2] : memref<64x16xbf16, #tpu.memory_space<vmem>>, vector<64x16xbf16>
    %c0_3 = arith.constant 0 : index
    %c0_4 = arith.constant 0 : index
    %2 = vector.load %arg4[%c0_3, %c0_4] : memref<16x64xbf16, #tpu.memory_space<vmem>>, vector<16x64xbf16>
    %c0_5 = arith.constant 0 : index
    %c0_6 = arith.constant 0 : index
    %3 = vector.load %arg6[%c0_5, %c0_6] : memref<64x128xf32, #tpu.memory_space<vmem>>, vector<64x128xf32>
    %4 = vector.extract_strided_slice %3 {offsets = [0, 0], sizes = [64, 64], strides = [1, 1]} : vector<64x128xf32> to vector<64x64xf32>
    %c0_7 = arith.constant 0 : index
    %c0_8 = arith.constant 0 : index
    %5 = vector.load %arg5[%c0_7, %c0_8] : memref<64x1xf32, #tpu.memory_space<vmem>>, vector<64x1xf32>
    %6 = vector.shape_cast %5 : vector<64x1xf32> to vector<64x1xf32>
    %7 = vector.broadcast %6 : vector<64x1xf32> to vector<64x128xf32>
    %8 = vector.extract_strided_slice %7 {offsets = [0, 0], sizes = [64, 64], strides = [1, 1]} : vector<64x128xf32> to vector<64x64xf32>
    %9 = tpu.iota {dimensions = array<i32: 1>} : vector<16x128xi32>
    %c64_i32 = arith.constant 64 : i32
    %10 = vector.broadcast %c64_i32 : i32 to vector<16x128xi32>
    %11 = arith.cmpi slt, %9, %10 : vector<16x128xi32>
    %cst = arith.constant -1.000000e+00 : f32
    %cst_9 = arith.constant 1.000000e+00 : f32
    %12 = vector.broadcast %cst : f32 to vector<16x128xf32>
    %13 = vector.broadcast %cst_9 : f32 to vector<16x128xf32>
    %14 = arith.select %11, %12, %13 : vector<16x128xi1>, vector<16x128xf32>
    %c0_10 = arith.constant 0 : index
    %c0_11 = arith.constant 0 : index
    %15 = vector.load %arg2[%c0_10, %c0_11] : memref<64x64xf32, #tpu.memory_space<vmem>>, vector<64x64xf32>
    %cst_12 = arith.constant dense<0.000000e+00> : vector<16x64xf32>
    %16 = tpu.matmul %0, %15, %cst_12 {dimension_numbers = #tpu.dot_dimension_numbers<[1], [0], [0], [1], [0, 0, 1, 1], [], []>, precision = #tpu.contract_precision<fp32>} : vector<16x64xf32>, vector<64x64xf32>, vector<16x64xf32> -> vector<16x64xf32>
    %17 = arith.truncf %16 : vector<16x64xf32> to vector<16x64xbf16>
    %cst_13 = arith.constant dense<0.000000e+00> : vector<64x64xf32>
    %18 = tpu.matmul %1, %17, %cst_13 {dimension_numbers = #tpu.dot_dimension_numbers<[1], [0], [0], [1], [0, 0, 1, 1], [], []>} : vector<64x16xbf16>, vector<16x64xbf16>, vector<64x64xf32> -> vector<64x64xf32>
    %19 = arith.addf %18, %4 : vector<64x64xf32>
    %20 = arith.mulf %19, %8 : vector<64x64xf32>
    %cst_14 = arith.constant 0.000000e+00 : f32
    %21 = vector.broadcast %cst_14 : f32 to vector<64x64xf32>
    %22 = arith.maximumf %20, %21 : vector<64x64xf32>
    %23 = arith.truncf %22 : vector<64x64xf32> to vector<64x64xbf16>
    %cst_15 = arith.constant dense<0.000000e+00> : vector<16x64xf32>
    %24 = tpu.matmul %2, %23, %cst_15 {dimension_numbers = #tpu.dot_dimension_numbers<[1], [0], [0], [1], [0, 0, 1, 1], [], []>} : vector<16x64xbf16>, vector<64x64xbf16>, vector<16x64xf32> -> vector<16x64xf32>
    %25 = arith.addf %16, %0 : vector<16x64xf32>
    %26 = tpu.concatenate %25, %24 in 1 : vector<16x64xf32>, vector<16x64xf32> -> vector<16x128xf32>
    %27 = arith.truncf %24 : vector<16x64xf32> to vector<16x64xbf16>
    %cst_16 = arith.constant dense<0.000000e+00> : vector<64x64xf32>
    %28 = tpu.matmul %1, %27, %cst_16 {dimension_numbers = #tpu.dot_dimension_numbers<[1], [0], [0], [1], [0, 0, 1, 1], [], []>} : vector<64x16xbf16>, vector<16x64xbf16>, vector<64x64xf32> -> vector<64x64xf32>
    %29 = tpu.concatenate %4, %28 in 1 : vector<64x64xf32>, vector<64x64xf32> -> vector<64x128xf32>
    %30 = arith.mulf %29, %7 : vector<64x128xf32>
    %cst_17 = arith.constant 0.000000e+00 : f32
    %31 = vector.broadcast %cst_17 : f32 to vector<64x128xf32>
    %32 = arith.maximumf %30, %31 : vector<64x128xf32>
    %33 = arith.truncf %32 : vector<64x128xf32> to vector<64x128xbf16>
    %cst_18 = arith.constant dense<0.000000e+00> : vector<16x128xf32>
    %34 = tpu.matmul %2, %33, %cst_18 {dimension_numbers = #tpu.dot_dimension_numbers<[1], [0], [0], [1], [0, 0, 1, 1], [], []>} : vector<16x64xbf16>, vector<64x128xbf16>, vector<16x128xf32> -> vector<16x128xf32>
    %c64_i32_19 = arith.constant 64 : i32
    %35 = tpu.dynamic_rotate %34 by %c64_i32_19 dim 1 : vector<16x128xf32>, i32 -> vector<16x128xf32>
    %36 = arith.mulf %35, %14 : vector<16x128xf32>
    %c1 = arith.constant 1 : index
    %37 = memref.load %arg0[%c1] : memref<10xf32, #tpu.memory_space<smem>>
    %38 = vector.broadcast %37 : f32 to vector<16x128xf32>
    %39 = arith.mulf %36, %38 : vector<16x128xf32>
    %40 = arith.addf %26, %39 : vector<16x128xf32>
    %c2_i32 = arith.constant 2 : i32
    %c8_i32 = arith.constant 8 : i32
    %41 = arith.addi %c2_i32, %c8_i32 : i32
    %c1_i32 = arith.constant 1 : i32
    %42:2 = scf.for %arg12 = %c2_i32 to %41 step %c1_i32 iter_args(%arg13 = %39, %arg14 = %40) -> (vector<16x128xf32>, vector<16x128xf32>)  : i32 {
      %56 = arith.truncf %arg13 : vector<16x128xf32> to vector<16x128xbf16>
      %cst_34 = arith.constant dense<0.000000e+00> : vector<64x128xf32>
      %57 = tpu.matmul %1, %56, %cst_34 {dimension_numbers = #tpu.dot_dimension_numbers<[1], [0], [0], [1], [0, 0, 1, 1], [], []>} : vector<64x16xbf16>, vector<16x128xbf16>, vector<64x128xf32> -> vector<64x128xf32>
      %58 = arith.addf %57, %3 : vector<64x128xf32>
      %59 = arith.mulf %58, %7 : vector<64x128xf32>
      %cst_35 = arith.constant 0.000000e+00 : f32
      %60 = vector.broadcast %cst_35 : f32 to vector<64x128xf32>
      %61 = arith.maximumf %59, %60 : vector<64x128xf32>
      %62 = arith.truncf %61 : vector<64x128xf32> to vector<64x128xbf16>
      %cst_36 = arith.constant dense<0.000000e+00> : vector<16x128xf32>
      %63 = tpu.matmul %2, %62, %cst_36 {dimension_numbers = #tpu.dot_dimension_numbers<[1], [0], [0], [1], [0, 0, 1, 1], [], []>} : vector<16x64xbf16>, vector<64x128xbf16>, vector<16x128xf32> -> vector<16x128xf32>
      %c64_i32_37 = arith.constant 64 : i32
      %64 = tpu.dynamic_rotate %63 by %c64_i32_37 dim 1 : vector<16x128xf32>, i32 -> vector<16x128xf32>
      %65 = arith.mulf %64, %14 : vector<16x128xf32>
      %66 = arith.index_cast %arg12 : i32 to index
      %67 = memref.load %arg0[%66] : memref<10xf32, #tpu.memory_space<smem>>
      %68 = vector.broadcast %67 : f32 to vector<16x128xf32>
      %69 = arith.mulf %65, %68 : vector<16x128xf32>
      %70 = arith.addf %arg14, %69 : vector<16x128xf32>
      scf.yield %69, %70 : vector<16x128xf32>, vector<16x128xf32>
    }
    %c8_i32_20 = arith.constant 8 : i32
    %c0_21 = arith.constant 0 : index
    %c0_22 = arith.constant 0 : index
    %43 = vector.load %arg7[%c0_21, %c0_22] : memref<128x128xf32, #tpu.memory_space<vmem>>, vector<128x128xf32>
    %cst_23 = arith.constant dense<0.000000e+00> : vector<16x128xf32>
    %44 = tpu.matmul %42#1, %43, %cst_23 {dimension_numbers = #tpu.dot_dimension_numbers<[1], [0], [0], [1], [0, 0, 1, 1], [], []>, precision = #tpu.contract_precision<fp32>} : vector<16x128xf32>, vector<128x128xf32>, vector<16x128xf32> -> vector<16x128xf32>
    %c0_24 = arith.constant 0 : index
    %c0_25 = arith.constant 0 : index
    %45 = vector.load %arg8[%c0_24, %c0_25] : memref<1x128xf32, #tpu.memory_space<vmem>>, vector<1x128xf32>
    %46 = vector.broadcast %45 : vector<1x128xf32> to vector<16x128xf32>
    %47 = arith.addf %44, %46 : vector<16x128xf32>
    %cst_26 = arith.constant 0.000000e+00 : f32
    %48 = vector.broadcast %cst_26 : f32 to vector<16x128xf32>
    %49 = arith.maximumf %47, %48 : vector<16x128xf32>
    %c0_27 = arith.constant 0 : index
    %c0_28 = arith.constant 0 : index
    %50 = vector.load %arg9[%c0_27, %c0_28] : memref<128x128xf32, #tpu.memory_space<vmem>>, vector<128x128xf32>
    %cst_29 = arith.constant dense<0.000000e+00> : vector<16x128xf32>
    %51 = tpu.matmul %49, %50, %cst_29 {dimension_numbers = #tpu.dot_dimension_numbers<[1], [0], [0], [1], [0, 0, 1, 1], [], []>, precision = #tpu.contract_precision<fp32>} : vector<16x128xf32>, vector<128x128xf32>, vector<16x128xf32> -> vector<16x128xf32>
    %c0_30 = arith.constant 0 : index
    %c0_31 = arith.constant 0 : index
    %52 = vector.load %arg10[%c0_30, %c0_31] : memref<1x128xf32, #tpu.memory_space<vmem>>, vector<1x128xf32>
    %53 = vector.broadcast %52 : vector<1x128xf32> to vector<16x128xf32>
    %54 = arith.addf %51, %53 : vector<16x128xf32>
    %c0_32 = arith.constant 0 : index
    %c0_33 = arith.constant 0 : index
    %55 = vector.load %arg11[%c0_32, %c0_33] : memref<16x128xf32, #tpu.memory_space<vmem>>, vector<16x128xf32>
    tpu.vector_store %arg11[%c0_32, %c0_33], %54 {strides = array<i32>} : memref<16x128xf32, #tpu.memory_space<vmem>>, vector<16x128xf32>,
    return
  }
}

</mosaic_0001>

<bundles_post_ra>
// kernel: tpu_custom_call.1
= control target key start
LH: loop header
LB: loop body
LE: loop exit
PB: predicated region body
PF: predicated region fallthrough
CT: control target
= control target key end

     0   :  { %16 = vsyncpa [#allocation5], 0  ;;  %s5601_s0 = inlined_call_operand.vmem [shape: f32[10], index: 0, kind: input, shape index: {}]   ;;  %s5602_s1 = inlined_call_operand.hbm [shape: f32[16,64], index: 1, kind: input, shape index: {}]   ;;  %s5603_s2 = inlined_call_operand.hbm [shape: f32[64,64], index: 2, kind: input, shape index: {}]   ;;  %s5604_s3 = inlined_call_operand.vmem [shape: bf16[64,16], index: 3, kind: input, shape index: {}]   ;;  %s5605_s4 = inlined_call_operand.hbm [shape: bf16[16,64], index: 4, kind: input, shape index: {}]   ;;  %s5606_s5 = inlined_call_operand.vmem [shape: f32[64,1], index: 5, kind: input, shape index: {}]   ;;  %s5607_s6 = inlined_call_operand.hbm [shape: f32[64,128], index: 6, kind: input, shape index: {}]   ;;  %s5608_s7 = inlined_call_operand.vmem [shape: f32[128,128], index: 7, kind: input, shape index: {}]   ;;  %s5609_s8 = inlined_call_operand.vmem [shape: f32[1,128], index: 8, kind: input, shape index: {}]   ;;  %s5610_s9 = inlined_call_operand.hbm [shape: f32[128,128], index: 9, kind: input, shape index: {}]   ;;  %s5611_s10 = inlined_call_operand.vmem [shape: f32[1,128], index: 10, kind: input, shape index: {}]   ;;  %s5612_s11 = inlined_call_operand.hbm [shape: f32[16,128], index: 11, kind: output, shape index: {}]  }
   0x1   :  { %17 = vsyncpa [#allocation3], 0 }
   0x2   :  { %18 = vsyncpa [#allocation8], 0 }
   0x3   :  { %19 = vsyncpa [#allocation11], 0 }
   0x4   :  { %20 = vsyncpa [#allocation4], 0  ;;  %s4453_s17 = smov [#allocation7]   ;;  %s4454_s19 = smov [#allocation10]  }
   0x5   :  { %s48_s18 = sshll.u32 %s4453_s17, 4  ;;  %s76_s20 = sshll.u32 %s4454_s19, 4  ;;  %s49_s18 = int_to_ptr.vmem [resolvable:$true] %s48_s18  ;;  %s4531_s20 = int_to_ptr.vmem [resolvable:$true] %s76_s20 }
   0x6   :  { %s4259_s23 = scalar_lea.hbm %s5603_s2, 1024 }
   0x7   :  { %p4260_p0 = scmp.ne.s32.totalorder %s5603_s2, %s4259_s23  ;;  %p4263_p1 = scmp.lt.u32.totalorder %s4259_s23, %s5603_s2 }
   0x9   :  { %p4265_p2 = pnand %p4263_p1, %p4260_p0 }
   0xb   :  { %4268 = shalt.err (!%p4265_p2)
}
   0xc   :  { %s4269_s28 = scalar_lea.vmem %s49_s18, 1024  ;;  %p4274_p4 = scmp.lt.s32.totalorder %s49_s18, %s49_s18 }
   0xd   :  { %p4270_p3 = scmp.ne.s32.totalorder %s49_s18, %s4269_s28  ;;  %p4275_p5 = scmp.lt.s32.totalorder %s4269_s28, %s4269_s28 }
   0xf   :  { %p4276_p6 = por %p4275_p5, %p4274_p4 }
  0x11   :  { %p4277_p7 = pnand %p4276_p6, %p4270_p3 }
  0x13   :  { %4280 = shalt.err (!%p4277_p7)
}
  0x14   :  { %s4455_s29 = smov 128   ;;  %s4456_s30 = smov 8  }
  0x15   :  { %54 = dma.hbm_to_vmem [thread:$0]  %s5603_s2, 1024, %s49_s18, [#allocation8], %s4455_s29, %s4455_s29, %s4456_s30  }
  0x16   :  { %s4281_s16 = scalar_lea.hbm %s5607_s6, 1024 }
  0x17   :  { %p4282_p8 = scmp.ne.s32.totalorder %s5607_s6, %s4281_s16  ;;  %p4285_p9 = scmp.lt.u32.totalorder %s4281_s16, %s5607_s6 }
  0x19   :  { %p4287_p10 = pnand %p4285_p9, %p4282_p8 }
  0x1b   :  { %4290 = shalt.err (!%p4287_p10)
}
  0x1c   :  { %s4291_s23 = scalar_lea.vmem %s4531_s20, 1024  ;;  %p4296_p12 = scmp.lt.s32.totalorder %s4531_s20, %s4531_s20 }
  0x1d   :  { %p4292_p11 = scmp.ne.s32.totalorder %s4531_s20, %s4291_s23  ;;  %p4297_p13 = scmp.lt.s32.totalorder %s4291_s23, %s4291_s23 }
  0x1f   :  { %p4298_p0 = por %p4297_p13, %p4296_p12 }
  0x21   :  { %p4299_p1 = pnand %p4298_p0, %p4292_p11 }
  0x23   :  { %4302 = shalt.err (!%p4299_p1)
}
  0x24   :  { %82 = dma.hbm_to_vmem [thread:$0]  %s5607_s6, 1024, %s4531_s20, [#allocation11], %s4455_s29, %s4455_s29, %s4456_s30  }
  0x25   :  { %s27_s26 = sshll.u32 %s5601_s0, 4  ;;  %s28_s26 = int_to_ptr.vmem [resolvable:$true] %s27_s26 }
  0x26   :  { %s4303_s27 = scalar_lea.vmem %s28_s26, 16  ;;  %p4308_p3 = scmp.lt.s32.totalorder %s28_s26, %s28_s26 }
  0x27   :  { %p4304_p2 = scmp.ne.s32.totalorder %s28_s26, %s4303_s27  ;;  %p4309_p4 = scmp.lt.s32.totalorder %s4303_s27, %s4303_s27 }
  0x29   :  { %p4310_p5 = por %p4309_p4, %p4308_p3 }
  0x2b   :  { %p4311_p6 = pnand %p4310_p5, %p4304_p2 }
  0x2d   :  { %4314 = shalt.err (!%p4311_p6)
}
  0x2e   :  { %s4457_s28 = smov [#allocation2]   ;;  %s4458_s12 = smov [#allocation6]  }
  0x2f   :  { %30 = dma.vmem_to_smem %s28_s26, 16, %s4457_s28, [#allocation5]  }
  0x30   :  { %s36_s13 = sshll.u32 %s4458_s12, 4  ;;  %s4459_s14 = smov [#allocation9]   ;;  %s37_s13 = int_to_ptr.vmem [resolvable:$true] %s36_s13 }
  0x31   :  { %s62_s15 = sshll.u32 %s4459_s14, 4  ;;  %s4315_s16 = scalar_lea.hbm %s5602_s1, 256  ;;  %s63_s15 = int_to_ptr.vmem [resolvable:$true] %s62_s15 }
  0x32   :  { %p4316_p7 = scmp.ne.s32.totalorder %s5602_s1, %s4315_s16  ;;  %p4319_p8 = scmp.lt.u32.totalorder %s4315_s16, %s5602_s1 }
  0x34   :  { %p4321_p9 = pnand %p4319_p8, %p4316_p7 }
  0x36   :  { %4324 = shalt.err (!%p4321_p9)
}
  0x37   :  { %s4325_s22 = scalar_lea.vmem %s37_s13, 256  ;;  %p4330_p11 = scmp.lt.s32.totalorder %s37_s13, %s37_s13 }
  0x38   :  { %p4326_p10 = scmp.ne.s32.totalorder %s37_s13, %s4325_s22  ;;  %p4331_p12 = scmp.lt.s32.totalorder %s4325_s22, %s4325_s22 }
  0x3a   :  { %p4332_p13 = por %p4331_p12, %p4330_p11 }
  0x3c   :  { %p4333_p0 = pnand %p4332_p13, %p4326_p10 }
  0x3e   :  { %4336 = shalt.err (!%p4333_p0)
}
  0x3f   :  { %42 = dma.hbm_to_vmem [thread:$0]  %s5602_s1, 256, %s37_s13, [#allocation3], %s4455_s29, %s4455_s29, %s4456_s30  }
  0x40   :  { %s4337_s25 = scalar_lea.hbm %s5605_s4, 128 }
  0x41   :  { %p4338_p1 = scmp.ne.s32.totalorder %s5605_s4, %s4337_s25  ;;  %p4341_p2 = scmp.lt.u32.totalorder %s4337_s25, %s5605_s4 }
  0x43   :  { %p4343_p3 = pnand %p4341_p2, %p4338_p1 }
  0x45   :  { %4346 = shalt.err (!%p4343_p3)
}
  0x46   :  { %s4347_s14 = scalar_lea.vmem %s63_s15, 128  ;;  %p4352_p5 = scmp.lt.s32.totalorder %s63_s15, %s63_s15 }
  0x47   :  { %p4348_p4 = scmp.ne.s32.totalorder %s63_s15, %s4347_s14  ;;  %p4353_p6 = scmp.lt.s32.totalorder %s4347_s14, %s4347_s14 }
  0x49   :  { %p4354_p7 = por %p4353_p6, %p4352_p5 }
  0x4b   :  { %p4355_p8 = pnand %p4354_p7, %p4348_p4 }
  0x4d   :  { %4358 = shalt.err (!%p4355_p8)
}
  0x4e   :  { %s4460_s1 = smov 64   ;;  %s4461_s13 = smov 4  }
  0x4f   :  { %68 = dma.hbm_to_vmem [thread:$0]  %s5605_s4, 128, %s63_s15, [#allocation8], %s4460_s1, %s4460_s1, %s4461_s13  }
  0x50   :  { %s4462_s16 = smov [#allocation12]   ;;  %s4359_s21 = scalar_lea.hbm %s5610_s9, 2048 }
  0x51   :  { %s92_s0 = sshll.u32 %s4462_s16, 4  ;;  %p4360_p9 = scmp.ne.s32.totalorder %s5610_s9, %s4359_s21  ;;  %s93_s0 = int_to_ptr.vmem [resolvable:$true] %s92_s0 }
  0x52   :  { %p4363_p10 = scmp.lt.u32.totalorder %s4359_s21, %s5610_s9 }
  0x54   :  { %p4365_p11 = pnand %p4363_p10, %p4360_p9 }
  0x56   :  { %4368 = shalt.err (!%p4365_p11)
}
  0x57   :  { %s4369_s24 = scalar_lea.vmem %s93_s0, 2048  ;;  %p4374_p13 = scmp.lt.s32.totalorder %s93_s0, %s93_s0 }
  0x58   :  { %p4370_p12 = scmp.ne.s32.totalorder %s93_s0, %s4369_s24  ;;  %p4375_p0 = scmp.lt.s32.totalorder %s4369_s24, %s4369_s24 }
  0x5a   :  { %p4376_p1 = por %p4375_p0, %p4374_p13 }
  0x5c   :  { %p4377_p2 = pnand %p4376_p1, %p4370_p12 }
  0x5e   :  { %4380 = shalt.err (!%p4377_p2)
}
  0x5f   :  { %98 = dma.hbm_to_vmem [thread:$0]  %s5610_s9, 2048, %s93_s0, [#allocation11], %s4455_s29, %s4455_s29, %s4456_s30  }
  0x60   :  { %4423 = dma.done.wait [#allocation5], 16  }
  0x61   :  { %4424 = vsyncadd [#allocation5], 4294967280 }
  0x62   :  { %4425 = dma.done.wait [#allocation3], 256  }
  0x63   :  { %4426 = vsyncadd [#allocation3], 4294967040 }
  0x64   :  { %4427 = dma.done.wait [#allocation8], 1152  }
  0x65   :  { %4428 = vsyncadd [#allocation8], 4294966144 }
  0x66   :  { %4429 = dma.done.wait [#allocation11], 3072  }
  0x67   :  { %4430 = vsyncadd [#allocation11], 4294964224 }
  0x68   :  { %119 = sfence }
  0x69   :  { %v193_v0 = vld [vmem:[#allocation7] sm:$0xff]  ;;  %v194_v1 = vld [vmem:[#allocation7 + $0x8] sm:$0xff]  ;;  %v195_v2 = vld [vmem:[#allocation7 + $0x10] sm:$0xff]  ;;  %vm201_vm0 = vcmask 523264   ;;  %vm809_vm1 = vcmask 130048   ;;  %vm4465_vm2 = vmmov 0  }
  0x6a   :  { %v209_v3 = vand.u32 4294901760, %v193_v0  ;;  %v212_v4 = vand.u32 4294901760, %v194_v1  ;;  %v196_v5 = vld [vmem:[#allocation7 + $0x18] sm:$0xff]  ;;  %v215_v6 = vand.u32 4294901760, %v195_v2  ;;  %v197_v7 = vld [vmem:[#allocation7 + $0x20] sm:$0xff]  ;;  %v198_v8 = vld [vmem:[#allocation7 + $0x28] sm:$0xff] }
  0x6b   :  { %v218_v9 = vand.u32 4294901760, %v196_v5  ;;  %v221_v10 = vand.u32 4294901760, %v197_v7  ;;  %v224_v11 = vand.u32 4294901760, %v198_v8  ;;  %v199_v12 = vld [vmem:[#allocation7 + $0x30] sm:$0xff]  ;;  %v200_v17 = vld [vmem:[#allocation7 + $0x38] sm:$0xff] }
  0x6c   :  { %v4615_v13 = vpack.c.bf16 %v212_v4, %v209_v3  ;;  %v4617_v14 = vsub.f32 %v193_v0, %v209_v3  ;;  %v4619_v15 = vsub.f32 %v194_v1, %v212_v4  ;;  %v4621_v16 = vsub.f32 %v195_v2, %v215_v6  ;;  %v4659_v37 = vld [vmem:[#allocation6] sm:$0xff]  ;;  %v4667_v45 = vld [vmem:[#allocation6 + $0x8] sm:$0xff] }
  0x6d   :  { %v4623_v18 = vpack.c.bf16 %v218_v9, %v215_v6  ;;  %v4625_v19 = vsub.f32 %v196_v5, %v218_v9  ;;  %v4627_v20 = vsub.f32 %v197_v7, %v221_v10  ;;  %v4632_v24 = vsub.f32 %v198_v8, %v224_v11 }
  0x6e   :  { %v304_v21 = vand.u32 4294901760, %v4617_v14  ;;  %v311_v22 = vand.u32 4294901760, %v4619_v15  ;;  %v318_v23 = vand.u32 4294901760, %v4621_v16  ;;  %3681 = vmatprep.subr.bf16.mxu1 %v4615_v13  ;;  %v227_v27 = vand.u32 4294901760, %v199_v12 }
  0x6f   :  { %v325_v25 = vand.u32 4294901760, %v4625_v19  ;;  %v332_v26 = vand.u32 4294901760, %v4627_v20  ;;  %v230_v28 = vand.u32 4294901760, %v200_v17  ;;  %3683 = vmatpush3.bf16.msra.mxu1 %v4615_v13  ;;  %v339_v32 = vand.u32 4294901760, %v4632_v24 }
  0x70   :  { %v305_v29 = vsub.f32 %v4617_v14, %v304_v21  ;;  %v312_v30 = vsub.f32 %v4619_v15, %v311_v22  ;;  %v319_v31 = vsub.f32 %v4621_v16, %v318_v23  ;;  %3685 = vmatprep.subr.bf16.mxu1 %v4623_v18  ;;  %v4652_v34 = vpack.c.bf16 %v224_v11, %v221_v10 }
  0x71   :  { %v326_v33 = vsub.f32 %v4625_v19, %v325_v25  ;;  %v333_v35 = vsub.f32 %v4627_v20, %v332_v26  ;;  %v4657_v36 = vsub.f32 %v199_v12, %v227_v27  ;;  %v340_v41 = vsub.f32 %v4632_v24, %v339_v32 }
  0x72   :  { %v306_v38 = vand.u32 4294901760, %v305_v29  ;;  %v313_v39 = vand.u32 4294901760, %v312_v30  ;;  %v320_v40 = vand.u32 4294901760, %v319_v31  ;;  %v4665_v44 = vsub.f32 %v200_v17, %v230_v28  ;;  %v4779_v31 = vld [vmem:[%s5604_s3 + $0x8] sm:$0xff]  }
  0x73   :  { %v327_v42 = vand.u32 4294901760, %v326_v33  ;;  %v346_v43 = vand.u32 4294901760, %v4657_v36  ;;  %3687 = vmatpush3.bf16.msra.mxu1 %v4623_v18  ;;  %v334_v47 = vand.u32 4294901760, %v333_v35  ;;  %v341_v48 = vand.u32 4294901760, %v340_v41  ;;  %v4793_v33 = vld [vmem:[%s5604_s3 + $0x18] sm:$0xff]  }
  0x74   :  { %v3696_v46 = vpack.c.bf16 %v313_v39, %v306_v38  ;;  %v203_v49 = vsel %vm201_vm0, %v4659_v37, 0  ;;  %3689 = vmatprep.subr.bf16.mxu1 %v4652_v34  ;;  %v353_v52 = vand.u32 4294901760, %v4665_v44  ;;  %v206_v54 = vsel %vm201_vm0, %v4667_v45, 0  ;;  %v4806_v39 = vld [vmem:[#allocation10 + $0x10] sm:$0xff] }
  0x75   :  { %v3700_v50 = vpack.c.bf16 %v327_v42, %v320_v40  ;;  %v347_v51 = vsub.f32 %v4657_v36, %v346_v43  ;;  %v4677_v53 = vand.u32 4294901760, %v203_v49  ;;  %v4685_v56 = vand.u32 4294901760, %v206_v54  ;;  %v4808_v40 = vld [vmem:[#allocation10] sm:$0xff] }
  0x76   :  { %3697 = vmatprep.subr.bf16.mxu0 %v3696_v46  ;;  %v354_v55 = vsub.f32 %v4665_v44, %v353_v52  ;;  %v3704_v57 = vpack.c.bf16 %v341_v48, %v334_v47  ;;  %v4687_v58 = vpack.c.bf16 %v230_v28, %v227_v27  ;;  %v3712_v6 = vpack.c.bf16 %v4619_v15, %v4617_v14  ;;  %v141_v15 = vld [vmem:[%s5606_s5] sm:$0xff] }
  0x77   :  { %3699 = vmatpush3.bf16.msra.mxu0 %v3696_v46  ;;  %3115 = vmatprep.mubr.f32.mxu0 %v4677_v53  ;;  %v348_v59 = vand.u32 4294901760, %v347_v51  ;;  %v282_v60 = vsub.f32 %v203_v49, %v4677_v53  ;;  %v292_v62 = vsub.f32 %v206_v54, %v4685_v56  ;;  %v3716_v7 = vpack.c.bf16 %v4625_v19, %v4621_v16  ;;  %v143_v16 = vld [vmem:[%s5606_s5 + $0x10] sm:$0xff]  ;;  %v144_v19 = vld [vmem:[%s5606_s5 + $0x18] sm:$0xff]  ;;  %v4815_v47 = vld [vmem:[#allocation10 + $0x8] sm:$0xff] }
  0x78   :  { %3701 = vmatprep.subr.bf16.mxu0 %v3700_v50  ;;  %v355_v61 = vand.u32 4294901760, %v354_v55  ;;  %3691 = vmatpush3.bf16.msra.mxu1 %v4652_v34  ;;  %v3720_v8 = vpack.c.bf16 %v4632_v24, %v4627_v20  ;;  %v3724_v9 = vpack.c.bf16 %v4665_v44, %v4657_v36  ;;  %v3744_v10 = vpack.c.bf16 %v311_v22, %v304_v21  ;;  %v145_v20 = vld [vmem:[%s5606_s5 + $0x20] sm:$0xff]  ;;  %v146_v21 = vld [vmem:[%s5606_s5 + $0x28] sm:$0xff]  ;;  %v147_v22 = vld [vmem:[%s5606_s5 + $0x30] sm:$0xff] }
  0x79   :  { %v283_v63 = vand.u32 4294901760, %v282_v60  ;;  %3693 = vmatprep.subr.bf16.mxu1 %v4687_v58  ;;  %v293_v0 = vand.u32 4294901760, %v292_v62  ;;  %v3748_v11 = vpack.c.bf16 %v325_v25, %v318_v23  ;;  %v3752_v12 = vpack.c.bf16 %v339_v32, %v332_v26  ;;  %v148_v23 = vld [vmem:[%s5606_s5 + $0x38] sm:$0xff]  ;;  %v4784_v32 = vld [vmem:[%s5604_s3 + $0x10] sm:$0xff]  }
  0x7a   :  { %v3708_v1 = vpack.c.bf16 %v355_v61, %v348_v59  ;;  %v3756_v14 = vpack.c.bf16 %v353_v52, %v346_v43  ;;  %v4463_v17 = vmov 0   ;;  %v4812_v43 = vld [vmem:[#allocation10 + $0x18] sm:$0xff]  ;;  %v4828_v59 = vld [vmem:[#allocation10 + $0x30] sm:$0xff] }
  0x7b   :  { %3703 = vmatpush3.bf16.msra.mxu0 %v3700_v50  ;;  %v284_v2 = vsub.f32 %v282_v60, %v283_v63  ;;  %v294_v3 = vsub.f32 %v292_v62, %v293_v0  ;;  %4252 = vset.pattern.permute.xlu0 %v4463_v17 }
  0x7c   :  { %3705 = vmatprep.subr.bf16.mxu0 %v3704_v57  ;;  %3695 = vmatpush3.bf16.msra.mxu1 %v4687_v58 }
  0x7d   :  { %v285_v4 = vand.u32 4294901760, %v284_v2  ;;  %v295_v5 = vand.u32 4294901760, %v294_v3  ;;  %4253 = vset.pattern.permute.xlu1 %v4463_v17  ;;  %151 = vperm.xlu0 %4252, %v141_v15   ;;  %v4832_v2 = vld [vmem:[#allocation10 + $0x38] sm:$0xff] }
  0x7e   :  { %161 = vperm.xlu1 %4253, %v143_v16  }
  0x7f   :  { %3707 = vmatpush3.bf16.msra.mxu0 %v3704_v57  ;;  %3096 = vmatprep.mubr.f32.mxu1 %v285_v4 }
  0x80   :  { %3709 = vmatprep.subr.bf16.mxu0 %v3708_v1  ;;  %3097 = vmatmul.mubr.f32.vlgmr.msra.gmra.mrb[0].mxu1 %v295_v5 }
  0x82   :  { %166 = vperm.xlu1 %4253, %v144_v19  }
  0x83   :  { %3711 = vmatpush3.bf16.msra.mxu0 %v3708_v1 }
  0x84   :  { %3713 = vmatprep.subr.bf16.mxu0 %v3712_v6 }
  0x86   :  { %3116 = vmatmul.mubr.f32.vlgmr.msra.gmra.mrb[0].mxu0 %v4685_v56  ;;  %176 = vperm.xlu1 %4253, %v146_v21  }
  0x87   :  { %3715 = vmatpush3.bf16.msra.mxu0 %v3712_v6  ;;  %3134 = vmatprep.mubr.f32.mxu0 %v282_v60  ;;  %v4835_v6 = vld [vmem:[#allocation10 + $0x28] sm:$0xff] }
  0x88   :  { %3717 = vmatprep.subr.bf16.mxu0 %v3716_v7 }
  0x8a   :  { %186 = vperm.xlu1 %4253, %v148_v23  }
  0x8b   :  { %3719 = vmatpush3.bf16.msra.mxu0 %v3716_v7 }
  0x8c   :  { %3721 = vmatprep.subr.bf16.mxu0 %v3720_v8 }
  0x8f   :  { %3723 = vmatpush3.bf16.msra.mxu0 %v3720_v8 }
  0x90   :  { %3725 = vmatprep.subr.bf16.mxu0 %v3724_v9 }
  0x93   :  { %3727 = vmatpush3.bf16.msra.mxu0 %v3724_v9 }
  0x94   :  { %3729 = vmatprep.subr.bf16.mxu0 %v4615_v13 }
  0x96   :  { %3135 = vmatmul.mubr.f32.vlgmr.msra.gmra.mrb[0].mxu0 %v292_v62  ;;  %v4830_v62 = vld [vmem:[#allocation10 + $0x20] sm:$0xff] }
  0x97   :  { %3731 = vmatpush3.bf16.msra.mxu0 %v4615_v13  ;;  %3153 = vmatprep.mubr.f32.mxu0 %v283_v63 }
  0x98   :  { %3733 = vmatprep.subr.bf16.mxu0 %v4623_v18 }
  0x9b   :  { %3735 = vmatpush3.bf16.msra.mxu0 %v4623_v18 }
  0x9c   :  { %3737 = vmatprep.subr.bf16.mxu0 %v4652_v34 }
  0x9f   :  { %3739 = vmatpush3.bf16.msra.mxu0 %v4652_v34 }
  0xa0   :  { %3741 = vmatprep.subr.bf16.mxu0 %v4687_v58 }
  0xa3   :  { %3743 = vmatpush3.bf16.msra.mxu0 %v4687_v58 }
  0xa4   :  { %3745 = vmatprep.subr.bf16.mxu0 %v3744_v10 }
  0xa6   :  { %3154 = vmatmul.mubr.f32.vlgmr.msra.gmra.mrb[0].mxu0 %v293_v0 }
  0xa7   :  { %3747 = vmatpush3.bf16.msra.mxu0 %v3744_v10  ;;  %3172 = vmatprep.mubr.f32.mxu0 %v4677_v53 }
  0xa8   :  { %3749 = vmatprep.subr.bf16.mxu0 %v3748_v11 }
  0xab   :  { %3751 = vmatpush3.bf16.msra.mxu0 %v3748_v11 }
  0xac   :  { %3753 = vmatprep.subr.bf16.mxu0 %v3752_v12 }
  0xaf   :  { %3755 = vmatpush3.bf16.msra.mxu0 %v3752_v12 }
  0xb0   :  { %3757 = vmatprep.subr.bf16.mxu0 %v3756_v14 }
  0xb3   :  { %3759 = vmatpush3.bf16.msra.mxu0 %v3756_v14 }
  0xb4   :  { %3761 = vmatprep.subr.bf16.mxu0 %v4615_v13 }
  0xb6   :  { %3173 = vmatmul.mubr.f32.vlgmr.msra.gmra.mrb[0].mxu0 %v4685_v56 }
  0xb7   :  { %3763 = vmatpush3.bf16.msra.mxu0 %v4615_v13  ;;  %3191 = vmatprep.mubr.f32.mxu0 %v4677_v53  ;;  %v4742_v13 = vld [vmem:[%s5604_s3] sm:$0xff]   ;;  %s2766_s3 = sld [smem:[#allocation2 + $0x1]] }
  0xb8   :  { %3765 = vmatprep.subr.bf16.mxu0 %v4623_v18  ;;  %3196 = vmatprep.mubr.msk.bf16.mxu1 %vm809_vm1, %v4742_v13 }
  0xbb   :  { %3767 = vmatpush3.bf16.msra.mxu0 %v4623_v18  ;;  %v142_v18 = vld [vmem:[%s5606_s5 + $0x8] sm:$0xff] }
  0xbc   :  { %3769 = vmatprep.subr.bf16.mxu0 %v4652_v34  ;;  %156 = vperm.xlu0 %4252, %v142_v18  }
  0xbf   :  { %3771 = vmatpush3.bf16.msra.mxu0 %v4652_v34  ;;  %v4464_v34 = vmov 0.0  }
  0xc0   :  { %3773 = vmatprep.subr.bf16.mxu0 %v4687_v58  ;;  %171 = vperm.xlu0 %4252, %v145_v20  }
  0xc3   :  { %3775 = vmatpush3.bf16.msra.mxu0 %v4687_v58 }
  0xc4   :  { %181 = vperm.xlu0 %4252, %v147_v22  }
  0xc6   :  { %3192 = vmatmul.mubr.f32.vlgmr.msra.gmra.mrb[0].mxu0 %v4685_v56 }
  0xfc   :  { %v4800_v35 = vpop.permute.xlu0 %151 }
  0xfd   :  { %v4802_v36 = vpop.permute.xlu1 %161 }
 0x101   :  { %v4810_v41 = vpop.permute.xlu1 %166 }
 0x105   :  { %v4825_v57 = vpop.permute.xlu1 %176 }
 0x109   :  { %v4842_v15 = vpop.permute.xlu1 %186 }
 0x13b   :  { %v4804_v38 = vpop.permute.xlu0 %156 }
 0x13f   :  { %v4820_v53 = vpop.permute.xlu0 %171 }
 0x143   :  { %v4837_v7 = vpop.permute.xlu0 %181 }
 0x153   :  { %v3098_v24 = vpop.f32.mrb[0].mxu1 }
 0x154   :  { %v287_v25 = vpop.f32.mrb[1].mxu1 }
 0x199   :  { %v3193_v26 = vpop.f32.mrb[0].mxu0 }
 0x19a   :  { %v4770_v27 = vadd.f32 %v3193_v26, %v3098_v24  ;;  %v778_v28 = vpop.f32.mrb[1].mxu0  ;;  %v4851_v26 = vld [vmem:[#allocation9] sm:$0xff]  }
 0x19b   :  { %v4772_v29 = vadd.f32 %v778_v28, %v287_v25 }
 0x19d   :  { %v788_v30 = vpack.c.bf16 %v4770_v27, %v4772_v29 }
 0x19f   :  { %3194 = vmatprep.subr.bf16.mxu1 %v788_v30 }
 0x1a0   :  { %3195 = vmatpush3.bf16.msra.mxu1 %v788_v30 }
 0x1a1   :  { %3204 = vmatprep.subr.bf16.mxu1 %v4464_v34 }
 0x1a3   :  { %3197 = vmatmul.mubr.msk.bf16.vlgmr.msra.gmra.mrb[4].mxu1 %vm809_vm1, %v4779_v31 }
 0x1a4   :  { %3200 = vmatprep.mubr.msk.bf16.mxu1 %vm809_vm1, %v4784_v32 }
 0x1ab   :  { %3201 = vmatmul.mubr.msk.bf16.gmra.mrb[8].mxu1 %vm809_vm1, %v4793_v33 }
 0x1ac   :  { %3212 = vmatprep.mubr.msk.bf16.mxu1 %vm4465_vm2, %v4464_v34 }
 0x276   :  { %v3198_v42 = vpop.f32.mrb[4].mxu1 }
 0x277   :  { %v865_v44 = vadd.f32 %v3198_v42, %v4806_v39  ;;  %v856_v46 = vpop.f32.mrb[5].mxu1 }
 0x278   :  { %v857_v48 = vadd.f32 %v856_v46, %v4808_v40  ;;  %v3199_v49 = vpop.f32.mrb[6].mxu1 }
 0x279   :  { %v889_v50 = vmul.f32 %v865_v44, %v4802_v36  ;;  %v868_v51 = vadd.f32 %v3199_v49, %v4812_v43  ;;  %v859_v52 = vpop.f32.mrb[7].mxu1 }
 0x27a   :  { %v887_v54 = vmul.f32 %v857_v48, %v4800_v35  ;;  %v860_v55 = vadd.f32 %v859_v52, %v4815_v47 }
 0x27b   :  { %v890_v56 = vmul.f32 %v868_v51, %v4810_v41  ;;  %v897_v60 = vmax.f32 %v889_v50, 0.0 }
 0x27c   :  { %v888_v58 = vmul.f32 %v860_v55, %v4804_v38  ;;  %v895_v63 = vmax.f32 %v887_v54, 0.0 }
 0x27d   :  { %v898_v61 = vmax.f32 %v890_v56, 0.0 }
 0x27e   :  { %v896_v0 = vmax.f32 %v888_v58, 0.0  ;;  %v3202_v1 = vpop.f32.mrb[8].mxu1 }
 0x27f   :  { %v904_v3 = vpack.c.bf16 %v898_v61, %v897_v60  ;;  %v881_v4 = vadd.f32 %v3202_v1, %v4828_v59  ;;  %v872_v5 = vpop.f32.mrb[9].mxu1 }
 0x280   :  { %v903_v8 = vpack.c.bf16 %v896_v0, %v895_v63  ;;  %v873_v9 = vadd.f32 %v872_v5, %v4830_v62  ;;  %v3203_v10 = vpop.f32.mrb[10].mxu1 }
 0x281   :  { %v893_v11 = vmul.f32 %v881_v4, %v4837_v7  ;;  %v884_v12 = vadd.f32 %v3203_v10, %v4832_v2  ;;  %v875_v14 = vpop.f32.mrb[11].mxu1 }
 0x282   :  { %v891_v16 = vmul.f32 %v873_v9, %v4820_v53  ;;  %v876_v17 = vadd.f32 %v875_v14, %v4835_v6  ;;  %3205 = vmatpush3.bf16.msra.mxu1 %v903_v8 }
 0x283   :  { %v894_v18 = vmul.f32 %v884_v12, %v4842_v15  ;;  %3206 = vmatprep.subr.bf16.mxu1 %v4464_v34  ;;  %v901_v20 = vmax.f32 %v893_v11, 0.0 }
 0x284   :  { %v892_v19 = vmul.f32 %v876_v17, %v4825_v57  ;;  %v899_v22 = vmax.f32 %v891_v16, 0.0 }
 0x285   :  { %v902_v21 = vmax.f32 %v894_v18, 0.0 }
 0x286   :  { %v900_v23 = vmax.f32 %v892_v19, 0.0  ;;  %3207 = vmatpush3.bf16.msra.mxu1 %v904_v3 }
 0x287   :  { %v906_v24 = vpack.c.bf16 %v902_v21, %v901_v20  ;;  %3208 = vmatprep.subr.bf16.mxu1 %v4464_v34 }
 0x288   :  { %v905_v25 = vpack.c.bf16 %v900_v23, %v899_v22 }
 0x28a   :  { %3209 = vmatpush3.bf16.msra.mxu1 %v905_v25 }
 0x28b   :  { %3210 = vmatprep.subr.bf16.mxu1 %v4464_v34 }
 0x28e   :  { %3211 = vmatpush3.bf16.msra.mxu1 %v906_v24 }
 0x291   :  { %3213 = vmatmul.mubr.msk.bf16.vlgmr.msra.gmra.mrb[12].mxu1 %vm201_vm0, %v4851_v26 }
 0x292   :  { %3218 = vmatprep.mubr.msk.bf16.mxu1 %vm809_vm1, %v4742_v13 }
 0x364   :  { %v4857_v28 = vpop.f32.mrb[12].mxu1 }
 0x365   :  { %v3214_v30 = vpop.f32.mrb[13].mxu1 }
 0x366   :  { %v4859_v42 = vpop.f32.mrb[14].mxu1 }
 0x367   :  { %v968_v44 = vpack.c.bf16 %v4859_v42, %v4857_v28  ;;  %v3215_v46 = vpop.f32.mrb[15].mxu1 }
 0x369   :  { %3216 = vmatprep.subr.bf16.mxu1 %v968_v44 }
 0x36a   :  { %3217 = vmatpush3.bf16.msra.mxu1 %v968_v44 }
 0x36b   :  { %3226 = vmatprep.subr.bf16.mxu1 %v4464_v34 }
 0x36d   :  { %3219 = vmatmul.mubr.msk.bf16.vlgmr.msra.gmra.mrb[16].mxu1 %vm809_vm1, %v4779_v31 }
 0x36e   :  { %3222 = vmatprep.mubr.msk.bf16.mxu1 %vm809_vm1, %v4784_v32 }
 0x375   :  { %3223 = vmatmul.mubr.msk.bf16.gmra.mrb[20].mxu1 %vm809_vm1, %v4793_v33 }
 0x376   :  { %3234 = vmatprep.mubr.msk.bf16.mxu1 %vm4465_vm2, %v4464_v34 }
 0x440   :  { %v3220_v48 = vpop.f32.mrb[16].mxu1 }
 0x441   :  { %v1003_v49 = vpop.f32.mrb[17].mxu1 }
 0x442   :  { %1042 = vrot.lane.b32.xlu0 %v1003_v49, %s4460_s1  ;;  %v3221_v50 = vpop.f32.mrb[18].mxu1 }
 0x443   :  { %v1006_v51 = vpop.f32.mrb[19].mxu1 }
 0x444   :  { %1044 = vrot.lane.b32.xlu1 %v1006_v51, %s4460_s1 }
 0x446   :  { %1046 = vrot.lane.b32.xlu0 %v3220_v48, %s4460_s1 }
 0x448   :  { %1048 = vrot.lane.b32.xlu1 %v3221_v50, %s4460_s1  ;;  %v3224_v52 = vpop.f32.mrb[20].mxu1 }
 0x449   :  { %v1019_v54 = vpop.f32.mrb[21].mxu1 }
 0x44a   :  { %1050 = vrot.lane.b32.xlu0 %v1019_v54, %s4460_s1  ;;  %v3225_v55 = vpop.f32.mrb[22].mxu1 }
 0x44b   :  { %v1022_v56 = vpop.f32.mrb[23].mxu1 }
 0x44c   :  { %1052 = vrot.lane.b32.xlu1 %v1022_v56, %s4460_s1 }
 0x44e   :  { %1054 = vrot.lane.b32.xlu0 %v3224_v52, %s4460_s1 }
 0x450   :  { %1056 = vrot.lane.b32.xlu1 %v3225_v55, %s4460_s1 }
 0x4b4   :  { %v1043_v58 = vpop.permute.xlu0 %1042 }
 0x4b5   :  { %v1066_v60 = vsel %vm201_vm0, %v4808_v40, %v1043_v58 }
 0x4b6   :  { %v1074_v61 = vmul.f32 %v1066_v60, %v4800_v35  ;;  %v1045_v63 = vpop.permute.xlu1 %1044 }
 0x4b7   :  { %v1067_v0 = vsel %vm201_vm0, %v4815_v47, %v1045_v63 }
 0x4b8   :  { %v1075_v1 = vmul.f32 %v1067_v0, %v4804_v38  ;;  %v1047_v3 = vpop.permute.xlu0 %1046  ;;  %v1082_v5 = vmax.f32 %v1074_v61, 0.0 }
 0x4b9   :  { %v1068_v4 = vsel %vm201_vm0, %v4806_v39, %v1047_v3 }
 0x4ba   :  { %v1083_v8 = vmax.f32 %v1075_v1, 0.0  ;;  %v1076_v9 = vmul.f32 %v1068_v4, %v4802_v36  ;;  %v1049_v10 = vpop.permute.xlu1 %1048  ;;  %v4466_v1 = vmov 1.0   ;;  %v1142_v4 = vstv %s2766_s3 }
 0x4bb   :  { %v1069_v11 = vsel %vm201_vm0, %v4812_v43, %v1049_v10  ;;  %v956_v10 = vadd.f32 %v4772_v29, %v4659_v37 }
 0x4bc   :  { %v1090_v12 = vpack.c.bf16 %v1083_v8, %v1082_v5  ;;  %v1077_v14 = vmul.f32 %v1069_v11, %v4810_v41  ;;  %v1051_v16 = vpop.permute.xlu0 %1050  ;;  %v1084_v18 = vmax.f32 %v1076_v9, 0.0 }
 0x4bd   :  { %v1070_v17 = vsel %vm201_vm0, %v4830_v62, %v1051_v16 }
 0x4be   :  { %v1085_v19 = vmax.f32 %v1077_v14, 0.0  ;;  %v1078_v20 = vmul.f32 %v1070_v17, %v4820_v53  ;;  %3227 = vmatpush3.bf16.msra.mxu1 %v1090_v12  ;;  %v1053_v21 = vpop.permute.xlu1 %1052 }
 0x4bf   :  { %v1071_v22 = vsel %vm201_vm0, %v4835_v6, %v1053_v21  ;;  %3228 = vmatprep.subr.bf16.mxu1 %v4464_v34 }
 0x4c0   :  { %v1091_v23 = vpack.c.bf16 %v1085_v19, %v1084_v18  ;;  %v1079_v24 = vmul.f32 %v1071_v22, %v4825_v57  ;;  %v1055_v25 = vpop.permute.xlu0 %1054  ;;  %v1086_v44 = vmax.f32 %v1078_v20, 0.0 }
 0x4c1   :  { %v1072_v30 = vsel %vm201_vm0, %v4828_v59, %v1055_v25 }
 0x4c2   :  { %v1087_v46 = vmax.f32 %v1079_v24, 0.0  ;;  %v1080_v48 = vmul.f32 %v1072_v30, %v4837_v7  ;;  %3229 = vmatpush3.bf16.msra.mxu1 %v1091_v23  ;;  %v1057_v49 = vpop.permute.xlu1 %1056 }
 0x4c3   :  { %v1073_v50 = vsel %vm201_vm0, %v4832_v2, %v1057_v49  ;;  %3230 = vmatprep.subr.bf16.mxu1 %v4464_v34 }
 0x4c4   :  { %v1092_v51 = vpack.c.bf16 %v1087_v46, %v1086_v44  ;;  %v1081_v52 = vmul.f32 %v1073_v50, %v4842_v15  ;;  %v1088_v54 = vmax.f32 %v1080_v48, 0.0 }
 0x4c6   :  { %v1089_v55 = vmax.f32 %v1081_v52, 0.0  ;;  %3231 = vmatpush3.bf16.msra.mxu1 %v1092_v51 }
 0x4c7   :  { %3232 = vmatprep.subr.bf16.mxu1 %v4464_v34  ;;  %v189_v34 = vlaneseq }
 0x4c8   :  { %v1093_v56 = vpack.c.bf16 %v1089_v55, %v1088_v54 }
 0x4c9   :  { %v190_v0 = vand.u32 127, %v189_v34 }
 0x4ca   :  { %3233 = vmatpush3.bf16.msra.mxu1 %v1093_v56 }
 0x4cb   :  { %vm191_vm3 = vcmp.lt.s32.totalorder %v190_v0, 64 }
 0x4cc   :  { %v4915_v3 = vsel %vm191_vm3, -1.0, %v4466_v1 }
 0x4cd   :  { %3235 = vmatmul.mubr.msk.bf16.vlgmr.msra.gmra.mrb[24].mxu1 %vm201_vm0, %v4851_v26 }
 0x5a0   :  { %v1128_v58 = vpop.f32.mrb[24].mxu1 }
 0x5a1   :  { %1135 = vrot.lane.b32.xlu0 %v1128_v58, %s4460_s1  ;;  %v3236_v60 = vpop.f32.mrb[25].mxu1 }
 0x5a2   :  { %v1131_v61 = vpop.f32.mrb[26].mxu1 }
 0x5a3   :  { %1137 = vrot.lane.b32.xlu1 %v1131_v61, %s4460_s1  ;;  %v3237_v63 = vpop.f32.mrb[27].mxu1 }
 0x5a5   :  { %960 = vrot.lane.b32.xlu0 %v4857_v28, %s4460_s1 }
 0x5a7   :  { %962 = vrot.lane.b32.xlu1 %v4859_v42, %s4460_s1  ;;  %v957_v42 = vadd.f32 %v4770_v27, %v4667_v45  ;;  %s4933_s1 = smov 2  }
 0x613   :  { %v1136_v5 = vpop.permute.xlu0 %1135 }
 0x614   :  { %v1139_v8 = vmul.f32 %v1136_v5, %v4915_v3 }
 0x615   :  { %v1138_v9 = vpop.permute.xlu1 %1137 }
 0x616   :  { %v1143_v11 = vmul.f32 %v1142_v4, %v1139_v8   ;;  %v1140_v28 = vmul.f32 %v1138_v9, %v4915_v3 }
 0x617   :  { %v961_v12 = vpop.permute.xlu0 %960 }
 0x618   :  { %v1144_v14 = vmul.f32 %v1142_v4, %v1140_v28   ;;  %v966_v16 = vsel %vm201_vm0, %v956_v10, %v961_v12 }
 0x619   :  { %v1145_v17 = vadd.f32 %v1143_v11, %v966_v16   ;;  %v963_v18 = vpop.permute.xlu1 %962 }
 0x61a   :  { %v967_v19 = vsel %vm201_vm0, %v957_v42, %v963_v18 }
 0x61b   :  { %v1146_v20 = vadd.f32 %v1144_v14, %v967_v19  }
 0x61c LB: > { %3240 = vmatprep.mubr.msk.bf16.mxu0 %vm809_vm1, %v4742_v13  ;;  %v1157_v37 = vpack.c.bf16 %v4443_v14, %v4447_v11  ;;  %v4467_v45 = vmov 0.0   ;;  %vm4468_vm4 = vmmov 0   ;;  %s4469_s25 = smov 64   ;;  %s1290_s26 = sld [smem:[#allocation2 + %s4451_s1]]  ;;  %s4451_s1 = sphi %s4933_s1, %s1152_s1   ;;  %v4447_v11 = vphi %v1143_v11, %v1292_v11   ;;  %v4443_v14 = vphi %v1144_v14, %v1293_v14   ;;  %v4439_v17 = vphi %v1145_v17, %v5620_v17   ;;  %v4435_v20 = vphi %v1146_v20, %v5619_v20  }
 0x61d   : > { %3248 = vmatprep.subr.bf16.mxu1 %v4467_v45  ;;  %3256 = vmatprep.mubr.msk.bf16.mxu1 %vm4468_vm4, %v4467_v45  ;;  %s1152_s1 = sadd.s32 1, %s4451_s1  }
 0x61e   : > { %3238 = vmatprep.subr.bf16.mxu0 %v1157_v37  ;;  %p1149_p3 = scmp.ge.s32.totalorder %s1152_s1, 10  }
 0x61f   : > { %3239 = vmatpush3.bf16.msra.mxu0 %v1157_v37  ;;  %s4470_s17 = smov (%p1149_p3), [#allocation13]  }
 0x620   :  { %s2719_s19 = sshll.u32 (%p1149_p3), %s4470_s17, 4  ;;  %s2720_s19 = int_to_ptr.vmem [resolvable:$true] %s2719_s19 }
 0x621   :  { %s4381_s21 = scalar_lea.vmem (%p1149_p3), %s2720_s19, 256  ;;  %p4386_p5 = scmp.lt.s32.totalorder (%p1149_p3), %s2720_s19, %s2720_s19 }
 0x622   : > { %3241 = vmatmul.mubr.msk.bf16.vlgmr.msra.gmra.mrb[0].mxu0 %vm809_vm1, %v4779_v31  ;;  %v1300_v31 = vld [vmem:[%s5608_s7 + $0x20] sm:$0xff] (%p1149_p3)  ;;  %p4382_p4 = scmp.ne.s32.totalorder (%p1149_p3), %s2720_s19, %s4381_s21  ;;  %p4387_p6 = scmp.lt.s32.totalorder (%p1149_p3), %s4381_s21, %s4381_s21 }
 0x623   : > { %3244 = vmatprep.mubr.msk.bf16.mxu0 %vm809_vm1, %v4784_v32  ;;  %v1301_v32 = vld [vmem:[%s5608_s7 + $0x28] sm:$0xff] (%p1149_p3) }
 0x624   :  { %p4388_p7 = por (%p1149_p3), %p4387_p6, %p4386_p5 }
 0x626   :  { %p4389_p8 = pnand (%p1149_p3), %p4388_p7, %p4382_p4 }
 0x62a   : > { %3245 = vmatmul.mubr.msk.bf16.gmra.mrb[4].mxu0 %vm809_vm1, %v4793_v33 }
 0x6f5   : > { %v3242_v27 = vpop.f32.mrb[0].mxu0 }
 0x6f6   : > { %v1201_v29 = vadd.f32 %v3242_v27, %v4806_v39  ;;  %v1192_v21 = vpop.f32.mrb[1].mxu0  ;;  %v1335_v39 = vand.u32 (%p1149_p3), 4294901760, %v1301_v32 }
 0x6f7   : > { %v1193_v22 = vadd.f32 %v1192_v21, %v4808_v40  ;;  %v3243_v23 = vpop.f32.mrb[2].mxu0 }
 0x6f8   : > { %v1225_v24 = vmul.f32 %v1201_v29, %v4802_v36  ;;  %v1204_v25 = vadd.f32 %v3243_v23, %v4812_v43  ;;  %v1195_v30 = vpop.f32.mrb[3].mxu0  ;;  %v1291_v29 = vstv %s1290_s26  ;;  %v1303_v43 = vld [vmem:[%s5608_s7 + $0x38] sm:$0xff] (%p1149_p3) }
 0x6f9   : > { %v1223_v44 = vmul.f32 %v1193_v22, %v4800_v35  ;;  %v1196_v46 = vadd.f32 %v1195_v30, %v4815_v47  ;;  %v1296_v30 = vld [vmem:[%s5608_s7] sm:$0xff] (%p1149_p3) }
 0x6fa   : > { %v1226_v48 = vmul.f32 %v1204_v25, %v4810_v41  ;;  %v1233_v50 = vmax.f32 %v1225_v24, 0.0  ;;  %v1302_v41 = vld [vmem:[%s5608_s7 + $0x30] sm:$0xff] (%p1149_p3) }
 0x6fb   : > { %v1224_v49 = vmul.f32 %v1196_v46, %v4804_v38  ;;  %v1231_v52 = vmax.f32 %v1223_v44, 0.0  ;;  %v1297_v44 = vld [vmem:[%s5608_s7 + $0x8] sm:$0xff] (%p1149_p3)  ;;  %v1298_v46 = vld [vmem:[%s5608_s7 + $0x10] sm:$0xff] (%p1149_p3)  ;;  %v1332_v38 = vand.u32 (%p1149_p3), 4294901760, %v1300_v31 }
 0x6fc   : > { %v1234_v51 = vmax.f32 %v1226_v48, 0.0  ;;  %v1326_v13 = vand.u32 (%p1149_p3), 4294901760, %v1298_v46 }
 0x6fd   : > { %v1232_v54 = vmax.f32 %v1224_v49, 0.0  ;;  %v3246_v55 = vpop.f32.mrb[4].mxu0  ;;  %v1320_v49 = vand.u32 (%p1149_p3), 4294901760, %v1296_v30 }
 0x6fe   : > { %v1240_v56 = vpack.c.bf16 %v1234_v51, %v1233_v50  ;;  %v1217_v58 = vadd.f32 %v3246_v55, %v4828_v59  ;;  %v1208_v60 = vpop.f32.mrb[5].mxu0  ;;  %v1323_v50 = vand.u32 (%p1149_p3), 4294901760, %v1297_v44  ;;  %v1299_v51 = vld [vmem:[%s5608_s7 + $0x18] sm:$0xff] (%p1149_p3)  ;;  %v1341_v59 = vand.u32 (%p1149_p3), 4294901760, %v1303_v43  ;;  %v1309_v55 = vld [vmem:[%s5608_s7 + $0x68] sm:$0xff] (%p1149_p3) }
 0x6ff   : > { %v1209_v61 = vadd.f32 %v1208_v60, %v4830_v62  ;;  %v3247_v63 = vpop.f32.mrb[6].mxu0  ;;  %v1239_v34 = vpack.c.bf16 %v1232_v54, %v1231_v52  ;;  %v1329_v33 = vand.u32 (%p1149_p3), 4294901760, %v1299_v51  ;;  %v1304_v62 = vld [vmem:[%s5608_s7 + $0x40] sm:$0xff] (%p1149_p3)  ;;  %v1307_v52 = vld [vmem:[%s5608_s7 + $0x58] sm:$0xff] (%p1149_p3)  ;;  %v5060_v60 = vsub.f32 (%p1149_p3), %v1296_v30, %v1320_v49 }
 0x700   : > { %v1229_v0 = vmul.f32 %v1217_v58, %v4837_v7  ;;  %v1220_v1 = vadd.f32 %v3247_v63, %v4832_v2  ;;  %v1211_v4 = vpop.f32.mrb[7].mxu0  ;;  %v5011_v36 = vpack.c.bf16 (%p1149_p3), %v1323_v50, %v1320_v49  ;;  %v1305_v2 = vld [vmem:[%s5608_s7 + $0x48] sm:$0xff] (%p1149_p3)  ;;  %v1308_v54 = vld [vmem:[%s5608_s7 + $0x60] sm:$0xff] (%p1149_p3)  ;;  %v1311_v58 = vld [vmem:[%s5608_s7 + $0x78] sm:$0xff] (%p1149_p3) }
 0x701   : > { %v1227_v5 = vmul.f32 %v1209_v61, %v4820_v53  ;;  %v1212_v8 = vadd.f32 %v1211_v4, %v4835_v6  ;;  %3249 = vmatpush3.bf16.msra.mxu1 %v1239_v34  ;;  %v5013_v40 = vpack.c.bf16 (%p1149_p3), %v1329_v33, %v1326_v13  ;;  %v5025_v53 = vpack.c.bf16 (%p1149_p3), %v1335_v39, %v1332_v38 }
 0x702   : > { %v1230_v9 = vmul.f32 %v1220_v1, %v4842_v15  ;;  %3250 = vmatprep.subr.bf16.mxu1 %v4467_v45  ;;  %v1237_v11 = vmax.f32 %v1229_v0, 0.0  ;;  %3777 = vmatprep.subr.bf16.mxu0 (%p1149_p3), %v5011_v36  ;;  %v5062_v61 = vsub.f32 (%p1149_p3), %v1297_v44, %v1323_v50  ;;  %v1353_v1 = vand.u32 (%p1149_p3), 4294901760, %v1307_v52 }
 0x703   : > { %v1228_v10 = vmul.f32 %v1212_v8, %v4825_v57  ;;  %v1235_v12 = vmax.f32 %v1227_v5, 0.0  ;;  %3779 = vmatpush3.bf16.msra.mxu0 (%p1149_p3), %v5011_v36  ;;  %v1338_v57 = vand.u32 (%p1149_p3), 4294901760, %v1302_v41  ;;  %v1356_v4 = vand.u32 (%p1149_p3), 4294901760, %v1308_v54 }
 0x704   : > { %v1238_v28 = vmax.f32 %v1230_v9, 0.0  ;;  %3781 = vmatprep.subr.bf16.mxu0 (%p1149_p3), %v5013_v40  ;;  %v1359_v5 = vand.u32 (%p1149_p3), 4294901760, %v1309_v55  ;;  %v1365_v9 = vand.u32 (%p1149_p3), 4294901760, %v1311_v58  ;;  %v5110_v49 = vsub.f32 (%p1149_p3), %v1307_v52, %v1353_v1 }
 0x705   : > { %v1236_v42 = vmax.f32 %v1228_v10, 0.0  ;;  %3251 = vmatpush3.bf16.msra.mxu1 %v1240_v56  ;;  %v1310_v56 = vld [vmem:[%s5608_s7 + $0x70] sm:$0xff] (%p1149_p3)  ;;  %v5071_v10 = vsub.f32 (%p1149_p3), %v1298_v46, %v1326_v13  ;;  %v5112_v50 = vsub.f32 (%p1149_p3), %v1308_v54, %v1356_v4 }
 0x706   : > { %v1242_v14 = vpack.c.bf16 %v1238_v28, %v1237_v11  ;;  %3252 = vmatprep.subr.bf16.mxu1 %v4467_v45  ;;  %v1362_v8 = vand.u32 (%p1149_p3), 4294901760, %v1310_v56  ;;  %v1430_v28 = vand.u32 (%p1149_p3), 4294901760, %v5062_v61  ;;  %v5115_v13 = vsub.f32 (%p1149_p3), %v1309_v55, %v1359_v5 }
 0x707   : > { %v1241_v16 = vpack.c.bf16 %v1236_v42, %v1235_v12  ;;  %3783 = vmatpush3.bf16.msra.mxu0 (%p1149_p3), %v5013_v40  ;;  %v5075_v12 = vsub.f32 (%p1149_p3), %v1299_v51, %v1329_v33  ;;  %v5077_v42 = vsub.f32 (%p1149_p3), %v1300_v31, %v1332_v38 }
 0x708   :  { %3785 = vmatprep.subr.bf16.mxu0 (%p1149_p3), %v5025_v53  ;;  %v5117_v31 = vsub.f32 (%p1149_p3), %v1310_v56, %v1362_v8 }
 0x709   : > { %3253 = vmatpush3.bf16.msra.mxu1 %v1241_v16 }
 0x70a   : > { %3254 = vmatprep.subr.bf16.mxu1 %v4467_v45 }
 0x70b   :  { %3787 = vmatpush3.bf16.msra.mxu0 (%p1149_p3), %v5025_v53 }
 0x70d   : > { %3255 = vmatpush3.bf16.msra.mxu1 %v1242_v14 }
 0x710   : > { %3257 = vmatmul.mubr.msk.bf16.vlgmr.msra.gmra.mrb[0].mxu1 %vm201_vm0, %v4851_v26  ;;  %v5040_v26 = vpack.c.bf16 (%p1149_p3), %v1341_v59, %v1338_v57 }
 0x712   :  { %3789 = vmatprep.subr.bf16.mxu0 (%p1149_p3), %v5040_v26 }
 0x713   :  { %3791 = vmatpush3.bf16.msra.mxu0 (%p1149_p3), %v5040_v26 }
 0x7e3   : > { %v1277_v18 = vpop.f32.mrb[0].mxu1 }
 0x7e4   : > { %1284 = vrot.lane.b32.xlu0 %v1277_v18, %s4469_s25  ;;  %v3258_v19 = vpop.f32.mrb[1].mxu1  ;;  %v5084_v18 = vpack.c.bf16 (%p1149_p3), %v1359_v5, %v1356_v4 }
 0x7e5   : > { %v1280_v37 = vpop.f32.mrb[2].mxu1  ;;  %v5086_v19 = vpack.c.bf16 (%p1149_p3), %v1365_v9, %v1362_v8 }
 0x7e6   : > { %v3259_v27 = vpop.f32.mrb[3].mxu1 }
 0x7e7   :  { %v5089_v27 = vsub.f32 (%p1149_p3), %v1301_v32, %v1335_v39  ;;  %v5119_v32 = vsub.f32 (%p1149_p3), %v1311_v58, %v1365_v9 }
 0x7e8   : > { %1286 = vrot.lane.b32.xlu0 %v1280_v37, %s4469_s25  ;;  %v1437_v37 = vand.u32 (%p1149_p3), 4294901760, %v5071_v10 }
 0x7e9   :  { %v1528_v52 = vand.u32 (%p1149_p3), 4294901760, %v5119_v32 }
 0x7ea   :  { %v1438_v51 = vsub.f32 (%p1149_p3), %v5071_v10, %v1437_v37 }
 0x856   : > { %v1285_v21 = vpop.permute.xlu0 %1284 }
 0x857   : > { %v1288_v22 = vmul.f32 %v1285_v21, %v4915_v3  ;;  %v1431_v21 = vsub.f32 (%p1149_p3), %v5062_v61, %v1430_v28 }
 0x859   : > { %v1292_v11 = vmul.f32 %v1291_v29, %v1288_v22   ;;  %v1444_v22 = vand.u32 (%p1149_p3), 4294901760, %v5075_v12  ;;  %v1432_v38 = vand.u32 (%p1149_p3), 4294901760, %v1431_v21 }
 0x85a   : > { %v1287_v23 = vpop.permute.xlu0 %1286 }
 0x85b   : > { %v1294_v45 = vadd.f32 %v4439_v17, %v1292_v11   ;;  %v1289_v24 = vmul.f32 %v1287_v23, %v4915_v3  ;;  %1151 = sbr.rel (!%p1149_p3) target bundleno = 1564 (0x61c), region = 95  ;;  %v1344_v3 = vand.u32 (%p1149_p3), 4294901760, %v1304_v62  ;;  %v1423_v11 = vand.u32 (%p1149_p3), 4294901760, %v5060_v60 }
 0x85c   :  { %v1451_v23 = vand.u32 (%p1149_p3), 4294901760, %v5077_v42  ;;  %v1445_v39 = vsub.f32 (%p1149_p3), %v5075_v12, %v1444_v22  ;;  %v5138_v55 = vpack.c.bf16 (%p1149_p3), %v1444_v22, %v1437_v37 }
 0x85d   : > { %v1293_v14 = vmul.f32 %v1291_v29, %v1289_v24   ;;  %v5620_v17 = vmov %v1294_v45  ;;  %v4997_v48 = vand.u32 (%p1149_p3), 4294901760, %v1294_v45  ;;  %v1424_v29 = vsub.f32 (%p1149_p3), %v5060_v60, %v1423_v11 }
 0x85e   :  { %v1347_v17 = vand.u32 (%p1149_p3), 4294901760, %v1305_v2  ;;  %v5099_v24 = vsub.f32 (%p1149_p3), %v1302_v41, %v1338_v57  ;;  %v5103_v30 = vsub.f32 (%p1149_p3), %v1304_v62, %v1344_v3  ;;  %v1458_v41 = vand.u32 (%p1149_p3), 4294901760, %v5089_v27 }
 0x85f   : > { %v1295_v25 = vadd.f32 %v4435_v20, %v1293_v14   ;;  %v5009_v35 = vsub.f32 (%p1149_p3), %v1294_v45, %v4997_v48  ;;  %v1425_v33 = vand.u32 (%p1149_p3), 4294901760, %v1424_v29  ;;  %v5136_v54 = vpack.c.bf16 (%p1149_p3), %v1430_v28, %v1423_v11 }
 0x860   :  { %v5069_v34 = vpack.c.bf16 (%p1149_p3), %v1347_v17, %v1344_v3  ;;  %v5106_v44 = vsub.f32 (%p1149_p3), %v1305_v2, %v1347_v17  ;;  %v1465_v57 = vand.u32 (%p1149_p3), 4294901760, %v5099_v24  ;;  %v1479_v62 = vand.u32 (%p1149_p3), 4294901760, %v5103_v30 }
 0x861   : > { %v5619_v20 = vmov %v1295_v25  ;;  %v1402_v47 = vand.u32 (%p1149_p3), 4294901760, %v5009_v35  ;;  %v5037_v15 = vand.u32 (%p1149_p3), 4294901760, %v1295_v25  ;;  %v1507_v3 = vand.u32 (%p1149_p3), 4294901760, %v5112_v50 }
 0x862   :  { %v1306_v20 = vld [vmem:[%s5608_s7 + $0x50] sm:$0xff]  ;;  %3793 = vmatprep.subr.bf16.mxu0 %v5069_v34  ;;  %v1486_v2 = vand.u32 4294901760, %v5106_v44  ;;  %v1514_v17 = vand.u32 4294901760, %v5115_v13  ;;  %v5140_v56 = vpack.c.bf16 %v1458_v41, %v1451_v23  ;;  %v3808_v9 = vpack.c.bf16 %v1432_v38, %v1425_v33 }
 0x863   :  { %v1403_v6 = vsub.f32 %v5009_v35, %v1402_v47  ;;  %v5066_v63 = vsub.f32 %v1295_v25, %v5037_v15  ;;  %v1350_v0 = vand.u32 4294901760, %v1306_v20  ;;  %3795 = vmatpush3.bf16.msra.mxu0 %v5069_v34  ;;  %v5101_v25 = vsub.f32 %v1303_v43, %v1341_v59 }
 0x864   :  { %v1452_v43 = vsub.f32 %v5077_v42, %v1451_v23  ;;  %v5150_v5 = vpack.c.bf16 %v1514_v17, %v1507_v3  ;;  %v1439_v11 = vand.u32 4294901760, %v1438_v51  ;;  %v1446_v28 = vand.u32 4294901760, %v1445_v39 }
 0x865   :  { %v1404_v7 = vand.u32 4294901760, %v1403_v6  ;;  %v5613_v14 = vand.u32 4294901760, %v5066_v63  ;;  %v5082_v16 = vpack.c.bf16 %v1353_v1, %v1350_v0  ;;  %v5108_v46 = vsub.f32 %v1306_v20, %v1350_v0 }
 0x866   :  { %v1472_v59 = vand.u32 4294901760, %v5101_v25  ;;  %v1521_v20 = vand.u32 4294901760, %v5117_v31  ;;  %v5144_v0 = vpack.c.bf16 %v1486_v2, %v1479_v62  ;;  %v1459_v1 = vsub.f32 %v5089_v27, %v1458_v41 }
 0x867   :  { %3292 = vmatprep.mubr.f32.mxu0 %v1404_v7  ;;  %v1413_v45 = vsub.f32 %v5066_v63, %v5613_v14  ;;  %3797 = vmatprep.subr.bf16.mxu0 %v5082_v16  ;;  %v1493_v6 = vand.u32 4294901760, %v5108_v46  ;;  %v1500_v7 = vand.u32 4294901760, %v5110_v49  ;;  %v1453_v29 = vand.u32 4294901760, %v1452_v43 }
 0x868   :  { %3799 = vmatpush3.bf16.msra.mxu0 %v5082_v16  ;;  %v5142_v58 = vpack.c.bf16 %v1472_v59, %v1465_v57  ;;  %v5152_v8 = vpack.c.bf16 %v1528_v52, %v1521_v20  ;;  %v1460_v21 = vand.u32 4294901760, %v1459_v1  ;;  %v3812_v22 = vpack.c.bf16 %v1446_v28, %v1439_v11 }
 0x869   :  { %3801 = vmatprep.subr.bf16.mxu0 %v5084_v18  ;;  %v5148_v4 = vpack.c.bf16 %v1500_v7, %v1493_v6  ;;  %v1414_v37 = vand.u32 4294901760, %v1413_v45  ;;  %v1466_v23 = vsub.f32 %v5099_v24, %v1465_v57  ;;  %v1473_v41 = vsub.f32 %v5101_v25, %v1472_v59 }
 0x86a   :  { %v3816_v14 = vpack.c.bf16 %v1460_v21, %v1453_v29  ;;  %v1480_v45 = vsub.f32 %v5103_v30, %v1479_v62  ;;  %v1487_v38 = vsub.f32 %v5106_v44, %v1486_v2  ;;  %v1494_v39 = vsub.f32 %v5108_v46, %v1493_v6 }
 0x86b   :  { %v1467_v33 = vand.u32 4294901760, %v1466_v23  ;;  %v1474_v51 = vand.u32 4294901760, %v1473_v41  ;;  %v1501_v59 = vsub.f32 %v5110_v49, %v1500_v7  ;;  %v1515_v62 = vsub.f32 %v5115_v13, %v1514_v17 }
 0x86c   :  { %3803 = vmatpush3.bf16.msra.mxu0 %v5084_v18  ;;  %v1481_v57 = vand.u32 4294901760, %v1480_v45  ;;  %v1488_v1 = vand.u32 4294901760, %v1487_v38  ;;  %v1522_v2 = vsub.f32 %v5117_v31, %v1521_v20  ;;  %v3844_v17 = vpack.c.bf16 %v5075_v12, %v5071_v10  ;;  %v5172_v20 = vld [vmem:[#allocation12] sm:$0xff]  ;;  %v5186_v12 = vld [vmem:[#allocation12 + $0x28] sm:$0xff] }
 0x86d   :  { %3805 = vmatprep.subr.bf16.mxu0 %v5086_v19  ;;  %v3820_v43 = vpack.c.bf16 %v1474_v51, %v1467_v33  ;;  %v1502_v28 = vand.u32 4294901760, %v1501_v59  ;;  %v1516_v21 = vand.u32 4294901760, %v1515_v62  ;;  %v5176_v33 = vld [vmem:[#allocation12 + $0x10] sm:$0xff]  ;;  %v2029_v51 = vand.u32 4294901760, %v5172_v20  ;;  %v5184_v10 = vld [vmem:[#allocation12 + $0x20] sm:$0xff] }
 0x86e   :  { %v3824_v11 = vpack.c.bf16 %v1488_v1, %v1481_v57  ;;  %v1523_v7 = vand.u32 4294901760, %v1522_v2  ;;  %v2035_v45 = vand.u32 4294901760, %v5176_v33  ;;  %v3848_v38 = vpack.c.bf16 %v5089_v27, %v5077_v42  ;;  %v5207_v42 = vld [vmem:[#allocation12 + $0x38] sm:$0xff] }
 0x86f   :  { %v2041_v57 = vand.u32 4294901760, %v5184_v10  ;;  %v2044_v1 = vand.u32 4294901760, %v5186_v12  ;;  %v3852_v27 = vpack.c.bf16 %v5101_v25, %v5099_v24  ;;  %v3856_v62 = vpack.c.bf16 %v5106_v44, %v5103_v30 }
 0x870   :  { %3807 = vmatpush3.bf16.msra.mxu0 %v5086_v19  ;;  %v3860_v25 = vpack.c.bf16 %v5110_v49, %v5108_v46  ;;  %v3864_v30 = vpack.c.bf16 %v5115_v13, %v5112_v50  ;;  %v3868_v44 = vpack.c.bf16 %v5119_v32, %v5117_v31  ;;  %v2017_v46 = vld [vmem:[#allocation12 + $0x60] sm:$0xff]  ;;  %v5311_v13 = vsub.f32 %v5172_v20, %v2029_v51 }
 0x871   :  { %3809 = vmatprep.subr.bf16.mxu0 %v3808_v9 }
 0x873   :  { %3293 = vmatmul.mubr.f32.vlgmr.msra.gmra.mrb[0].mxu0 %v1414_v37  ;;  %v1508_v37 = vsub.f32 %v5112_v50, %v1507_v3  ;;  %v3840_v3 = vpack.c.bf16 %v5062_v61, %v5060_v60  ;;  %v5181_v61 = vld [vmem:[#allocation12 + $0x18] sm:$0xff] }
 0x874   :  { %3811 = vmatpush3.bf16.msra.mxu0 %v3808_v9  ;;  %3327 = vmatprep.mubr.f32.mxu0 %v4997_v48  ;;  %v1495_v9 = vand.u32 4294901760, %v1494_v39  ;;  %v2038_v39 = vand.u32 4294901760, %v5181_v61 }
 0x875   :  { %3813 = vmatprep.subr.bf16.mxu0 %v3812_v22  ;;  %v1509_v29 = vand.u32 4294901760, %v1508_v37  ;;  %v2050_v37 = vand.u32 4294901760, %v5207_v42 }
 0x876   :  { %v3828_v6 = vpack.c.bf16 %v1502_v28, %v1495_v9  ;;  %v5203_v59 = vpack.c.bf16 %v2038_v39, %v2035_v45  ;;  %v5205_v9 = vld [vmem:[#allocation12 + $0x30] sm:$0xff] }
 0x877   :  { %v2047_v28 = vand.u32 4294901760, %v5205_v9 }
 0x878   :  { %3815 = vmatpush3.bf16.msra.mxu0 %v3812_v22  ;;  %v1529_v22 = vsub.f32 %v5119_v32, %v1528_v52  ;;  %v5174_v52 = vld [vmem:[#allocation12 + $0x8] sm:$0xff]  ;;  %v2019_v32 = vld [vmem:[#allocation12 + $0x70] sm:$0xff] }
 0x879   :  { %3817 = vmatprep.subr.bf16.mxu0 %v3816_v14  ;;  %v2032_v60 = vand.u32 4294901760, %v5174_v52  ;;  %v5230_v24 = vpack.c.bf16 %v2050_v37, %v2047_v28 }
 0x87a   :  { %v1530_v23 = vand.u32 4294901760, %v1529_v22 }
 0x87b   :  { %v5316_v31 = vsub.f32 %v5174_v52, %v2032_v60 }
 0x87c   :  { %3819 = vmatpush3.bf16.msra.mxu0 %v3816_v14  ;;  %v3832_v14 = vpack.c.bf16 %v1516_v21, %v1509_v29  ;;  %v3836_v41 = vpack.c.bf16 %v1530_v23, %v1523_v7 }
 0x87d   :  { %3821 = vmatprep.subr.bf16.mxu0 %v3820_v43 }
 0x880   :  { %3823 = vmatpush3.bf16.msra.mxu0 %v3820_v43  ;;  %v5195_v43 = vpack.c.bf16 %v2032_v60, %v2029_v51 }
 0x881   :  { %3825 = vmatprep.subr.bf16.mxu0 %v3824_v11 }
 0x882   :  { %3969 = vmatprep.subr.bf16.mxu1 %v5195_v43 }
 0x883   :  { %3971 = vmatpush3.bf16.msra.mxu1 %v5195_v43 }
 0x884   :  { %3827 = vmatpush3.bf16.msra.mxu0 %v3824_v11  ;;  %3973 = vmatprep.subr.bf16.mxu1 %v5203_v59  ;;  %v5218_v11 = vpack.c.bf16 %v2044_v1, %v2041_v57 }
 0x885   :  { %3829 = vmatprep.subr.bf16.mxu0 %v3828_v6 }
 0x887   :  { %3975 = vmatpush3.bf16.msra.mxu1 %v5203_v59 }
 0x888   :  { %3831 = vmatpush3.bf16.msra.mxu0 %v3828_v6  ;;  %3977 = vmatprep.subr.bf16.mxu1 %v5218_v11 }
 0x889   :  { %3833 = vmatprep.subr.bf16.mxu0 %v3832_v14 }
 0x88b   :  { %3979 = vmatpush3.bf16.msra.mxu1 %v5218_v11 }
 0x88c   :  { %3835 = vmatpush3.bf16.msra.mxu0 %v3832_v14  ;;  %3981 = vmatprep.subr.bf16.mxu1 %v5230_v24 }
 0x88d   :  { %3837 = vmatprep.subr.bf16.mxu0 %v3836_v41 }
 0x88f   :  { %3983 = vmatpush3.bf16.msra.mxu1 %v5230_v24 }
 0x890   :  { %3839 = vmatpush3.bf16.msra.mxu0 %v3836_v41 }
 0x891   :  { %3841 = vmatprep.subr.bf16.mxu0 %v3840_v3 }
 0x893   :  { %3328 = vmatmul.mubr.f32.vlgmr.msra.gmra.mrb[0].mxu0 %v5037_v15 }
 0x894   :  { %3843 = vmatpush3.bf16.msra.mxu0 %v3840_v3  ;;  %3362 = vmatprep.mubr.f32.mxu0 %v5009_v35  ;;  %v5621_v35 = vand.u32 4294901760, %v5066_v63 }
 0x895   :  { %3845 = vmatprep.subr.bf16.mxu0 %v3844_v17 }
 0x898   :  { %3847 = vmatpush3.bf16.msra.mxu0 %v3844_v17 }
 0x899   :  { %3849 = vmatprep.subr.bf16.mxu0 %v3848_v38 }
 0x89c   :  { %3851 = vmatpush3.bf16.msra.mxu0 %v3848_v38 }
 0x89d   :  { %3853 = vmatprep.subr.bf16.mxu0 %v3852_v27 }
 0x8a0   :  { %3855 = vmatpush3.bf16.msra.mxu0 %v3852_v27 }
 0x8a1   :  { %3857 = vmatprep.subr.bf16.mxu0 %v3856_v62 }
 0x8a4   :  { %3859 = vmatpush3.bf16.msra.mxu0 %v3856_v62 }
 0x8a5   :  { %3861 = vmatprep.subr.bf16.mxu0 %v3860_v25 }
 0x8a8   :  { %3863 = vmatpush3.bf16.msra.mxu0 %v3860_v25 }
 0x8a9   :  { %3865 = vmatprep.subr.bf16.mxu0 %v3864_v30 }
 0x8ac   :  { %3867 = vmatpush3.bf16.msra.mxu0 %v3864_v30 }
 0x8ad   :  { %3869 = vmatprep.subr.bf16.mxu0 %v3868_v44 }
 0x8b0   :  { %3871 = vmatpush3.bf16.msra.mxu0 %v3868_v44 }
 0x8b1   :  { %3873 = vmatprep.subr.bf16.mxu0 %v5011_v36 }
 0x8b3   :  { %3363 = vmatmul.mubr.f32.vlgmr.msra.gmra.mrb[0].mxu0 %v5066_v63  ;;  %v2016_v63 = vld [vmem:[#allocation12 + $0x58] sm:$0xff] }
 0x8b4   :  { %3875 = vmatpush3.bf16.msra.mxu0 %v5011_v36  ;;  %3397 = vmatprep.mubr.f32.mxu0 %v1402_v47 }
 0x8b5   :  { %3877 = vmatprep.subr.bf16.mxu0 %v5013_v40 }
 0x8b8   :  { %3879 = vmatpush3.bf16.msra.mxu0 %v5013_v40 }
 0x8b9   :  { %3881 = vmatprep.subr.bf16.mxu0 %v5025_v53 }
 0x8bc   :  { %3883 = vmatpush3.bf16.msra.mxu0 %v5025_v53 }
 0x8bd   :  { %3885 = vmatprep.subr.bf16.mxu0 %v5040_v26 }
 0x8c0   :  { %3887 = vmatpush3.bf16.msra.mxu0 %v5040_v26 }
 0x8c1   :  { %3889 = vmatprep.subr.bf16.mxu0 %v5069_v34 }
 0x8c4   :  { %3891 = vmatpush3.bf16.msra.mxu0 %v5069_v34 }
 0x8c5   :  { %3893 = vmatprep.subr.bf16.mxu0 %v5082_v16 }
 0x8c8   :  { %3895 = vmatpush3.bf16.msra.mxu0 %v5082_v16 }
 0x8c9   :  { %3897 = vmatprep.subr.bf16.mxu0 %v5084_v18 }
 0x8cc   :  { %3899 = vmatpush3.bf16.msra.mxu0 %v5084_v18 }
 0x8cd   :  { %3901 = vmatprep.subr.bf16.mxu0 %v5086_v19 }
 0x8d0   :  { %3903 = vmatpush3.bf16.msra.mxu0 %v5086_v19 }
 0x8d1   :  { %3905 = vmatprep.subr.bf16.mxu0 %v5136_v54 }
 0x8d3   :  { %3398 = vmatmul.mubr.f32.vlgmr.msra.gmra.mrb[0].mxu0 %v5621_v35 }
 0x8d4   :  { %3907 = vmatpush3.bf16.msra.mxu0 %v5136_v54  ;;  %3432 = vmatprep.mubr.f32.mxu0 %v4997_v48  ;;  %v2020_v54 = vld [vmem:[#allocation12 + $0x78] sm:$0xff] }
 0x8d5   :  { %3909 = vmatprep.subr.bf16.mxu0 %v5138_v55 }
 0x8d8   :  { %3911 = vmatpush3.bf16.msra.mxu0 %v5138_v55  ;;  %v2071_v55 = vand.u32 4294901760, %v2019_v32 }
 0x8d9   :  { %3913 = vmatprep.subr.bf16.mxu0 %v5140_v56 }
 0x8dc   :  { %3915 = vmatpush3.bf16.msra.mxu0 %v5140_v56  ;;  %v2074_v56 = vand.u32 4294901760, %v2020_v54 }
 0x8dd   :  { %3917 = vmatprep.subr.bf16.mxu0 %v5142_v58 }
 0x8e0   :  { %3919 = vmatpush3.bf16.msra.mxu0 %v5142_v58  ;;  %v2132_v58 = vand.u32 4294901760, %v5311_v13 }
 0x8e1   :  { %3921 = vmatprep.subr.bf16.mxu0 %v5144_v0 }
 0x8e4   :  { %3923 = vmatpush3.bf16.msra.mxu0 %v5144_v0  ;;  %v2139_v0 = vand.u32 4294901760, %v5316_v31 }
 0x8e5   :  { %3925 = vmatprep.subr.bf16.mxu0 %v5148_v4 }
 0x8e8   :  { %3927 = vmatpush3.bf16.msra.mxu0 %v5148_v4  ;;  %v5322_v4 = vpack.c.bf16 %v2074_v56, %v2071_v55 }
 0x8e9   :  { %3929 = vmatprep.subr.bf16.mxu0 %v5150_v5 }
 0x8ec   :  { %3931 = vmatpush3.bf16.msra.mxu0 %v5150_v5  ;;  %v2133_v5 = vsub.f32 %v5311_v13, %v2132_v58 }
 0x8ed   :  { %3933 = vmatprep.subr.bf16.mxu0 %v5152_v8 }
 0x8ee   :  { %v2134_v2 = vand.u32 4294901760, %v2133_v5 }
 0x8f0   :  { %3935 = vmatpush3.bf16.msra.mxu0 %v5152_v8  ;;  %v2140_v8 = vsub.f32 %v5316_v31, %v2139_v0 }
 0x8f1   :  { %3937 = vmatprep.subr.bf16.mxu0 %v5011_v36 }
 0x8f2   :  { %v2141_v6 = vand.u32 4294901760, %v2140_v8  ;;  %v5393_v8 = vpack.c.bf16 %v5316_v31, %v5311_v13 }
 0x8f3   :  { %3433 = vmatmul.mubr.f32.vlgmr.msra.gmra.mrb[0].mxu0 %v5037_v15 }
 0x8f4   :  { %3939 = vmatpush3.bf16.msra.mxu0 %v5011_v36  ;;  %3467 = vmatprep.mubr.f32.mxu0 %v4997_v48  ;;  %v2013_v48 = vld [vmem:[#allocation12 + $0x40] sm:$0xff]  ;;  %v2014_v36 = vld [vmem:[#allocation12 + $0x48] sm:$0xff]  ;;  %v5332_v29 = vpack.c.bf16 %v2141_v6, %v2134_v2 }
 0x8f5   :  { %3941 = vmatprep.subr.bf16.mxu0 %v5013_v40  ;;  %v2056_v47 = vand.u32 4294901760, %v2014_v36 }
 0x8f7   :  { %v5337_v22 = vsub.f32 %v2014_v36, %v2056_v47 }
 0x8f8   :  { %3943 = vmatpush3.bf16.msra.mxu0 %v5013_v40  ;;  %v2053_v40 = vand.u32 4294901760, %v2013_v48 }
 0x8f9   :  { %3945 = vmatprep.subr.bf16.mxu0 %v5025_v53  ;;  %v2195_v7 = vand.u32 4294901760, %v5337_v22 }
 0x8fa   :  { %v5335_v21 = vsub.f32 %v2013_v48, %v2053_v40 }
 0x8fb   :  { %v2196_v41 = vsub.f32 %v5337_v22, %v2195_v7 }
 0x8fc   :  { %3947 = vmatpush3.bf16.msra.mxu0 %v5025_v53  ;;  %v5298_v53 = vpack.c.bf16 %v2056_v47, %v2053_v40  ;;  %v2188_v14 = vand.u32 4294901760, %v5335_v21  ;;  %v5397_v2 = vpack.c.bf16 %v5337_v22, %v5335_v21 }
 0x8fd   :  { %3949 = vmatprep.subr.bf16.mxu0 %v5040_v26  ;;  %v2197_v52 = vand.u32 4294901760, %v2196_v41 }
 0x8fe   :  { %3985 = vmatprep.subr.bf16.mxu1 %v5298_v53  ;;  %v2189_v23 = vsub.f32 %v5335_v21, %v2188_v14 }
 0x8ff   :  { %3987 = vmatpush3.bf16.msra.mxu1 %v5298_v53 }
 0x900   :  { %3951 = vmatpush3.bf16.msra.mxu0 %v5040_v26  ;;  %v2015_v26 = vld [vmem:[#allocation12 + $0x50] sm:$0xff]  ;;  %v2190_v20 = vand.u32 4294901760, %v2189_v23 }
 0x901   :  { %3953 = vmatprep.subr.bf16.mxu0 %v5069_v34 }
 0x902   :  { %v5353_v38 = vpack.c.bf16 %v2197_v52, %v2190_v20  ;;  %v2772_v20 = vld [vmem:[%s5609_s8] ss:$0 sm:$0xff]  ;;  %v5417_v52 = vsub.f32 %v5176_v33, %v2035_v45  ;;  %v5434_v45 = vsub.f32 %v5186_v12, %v2044_v1  ;;  %v5454_v1 = vsub.f32 %v5205_v9, %v2047_v28 }
 0x904   :  { %3955 = vmatpush3.bf16.msra.mxu0 %v5069_v34  ;;  %v2059_v34 = vand.u32 4294901760, %v2015_v26  ;;  %v2167_v12 = vand.u32 4294901760, %v5434_v45  ;;  %v2174_v28 = vand.u32 4294901760, %v5454_v1 }
 0x905   :  { %3957 = vmatprep.subr.bf16.mxu0 %v5082_v16 }
 0x906   :  { %v5347_v3 = vsub.f32 %v2015_v26, %v2059_v34  ;;  %v5372_v26 = vsub.f32 %v2019_v32, %v2071_v55 }
 0x908   :  { %3959 = vmatpush3.bf16.msra.mxu0 %v5082_v16  ;;  %v2062_v16 = vand.u32 4294901760, %v2016_v63  ;;  %v2202_v51 = vand.u32 4294901760, %v5347_v3  ;;  %v5625_v21 = vand.u32 4294901760, %v5372_v26 }
 0x909   :  { %3961 = vmatprep.subr.bf16.mxu0 %v5084_v18 }
 0x90a   :  { %v5349_v17 = vsub.f32 %v2016_v63, %v2062_v16  ;;  %v2203_v27 = vsub.f32 %v5347_v3, %v2202_v51  ;;  %v5374_v63 = vsub.f32 %v2020_v54, %v2074_v56 }
 0x90c   :  { %3963 = vmatpush3.bf16.msra.mxu0 %v5084_v18  ;;  %v5302_v18 = vpack.c.bf16 %v2062_v16, %v2059_v34  ;;  %v5618_v60 = vand.u32 4294901760, %v5349_v17  ;;  %v2204_v44 = vand.u32 4294901760, %v2203_v27  ;;  %v5401_v6 = vpack.c.bf16 %v5349_v17, %v5347_v3 }
 0x90d   :  { %3965 = vmatprep.subr.bf16.mxu0 %v5086_v19  ;;  %v5409_v41 = vpack.c.bf16 %v5374_v63, %v5372_v26  ;;  %v5422_v27 = vsub.f32 %v5181_v61, %v2038_v39  ;;  %v5626_v22 = vand.u32 4294901760, %v5374_v63 }
 0x90e   :  { %3989 = vmatprep.subr.bf16.mxu1 %v5302_v18  ;;  %v2210_v62 = vsub.f32 %v5349_v17, %v5618_v60 }
 0x90f   :  { %3991 = vmatpush3.bf16.msra.mxu1 %v5302_v18 }
 0x910   :  { %3967 = vmatpush3.bf16.msra.mxu0 %v5086_v19  ;;  %v2018_v19 = vld [vmem:[#allocation12 + $0x68] sm:$0xff]  ;;  %v2211_v35 = vand.u32 4294901760, %v2210_v62 }
 0x911   :  { %v2068_v49 = vand.u32 4294901760, %v2018_v19 }
 0x912   :  { %v5367_v40 = vpack.c.bf16 %v2211_v35, %v2204_v44 }
 0x913   :  { %3468 = vmatmul.mubr.f32.vlgmr.msra.gmra.mrb[0].mxu0 %v5037_v15  ;;  %v2065_v15 = vand.u32 4294901760, %v2017_v46  ;;  %v5363_v30 = vsub.f32 %v2018_v19, %v2068_v49  ;;  %v5614_v19 = vand.u32 4294901760, %v5374_v63 }
 0x915   :  { %v5306_v50 = vpack.c.bf16 %v2068_v49, %v2065_v15  ;;  %v5361_v25 = vsub.f32 %v2017_v46, %v2065_v15  ;;  %v5616_v36 = vand.u32 4294901760, %v5363_v30  ;;  %v5615_v46 = vand.u32 4294901760, %v5372_v26 }
 0x916   :  { %v2238_v32 = vsub.f32 %v5374_v63, %v5614_v19 }
 0x917   :  { %3993 = vmatprep.subr.bf16.mxu1 %v5306_v50  ;;  %v5617_v48 = vand.u32 4294901760, %v5361_v25  ;;  %v2224_v34 = vsub.f32 %v5363_v30, %v5616_v36  ;;  %v2231_v49 = vsub.f32 %v5372_v26, %v5615_v46  ;;  %v5405_v23 = vpack.c.bf16 %v5363_v30, %v5361_v25 }
 0x918   :  { %3995 = vmatpush3.bf16.msra.mxu1 %v5306_v50  ;;  %v2239_v56 = vand.u32 4294901760, %v2238_v32 }
 0x919   :  { %3997 = vmatprep.subr.bf16.mxu1 %v5322_v4  ;;  %v2217_v47 = vsub.f32 %v5361_v25, %v5617_v48  ;;  %v2225_v15 = vand.u32 4294901760, %v2224_v34  ;;  %v2232_v55 = vand.u32 4294901760, %v2231_v49  ;;  %v2146_v34 = vand.u32 4294901760, %v5417_v52 }
 0x91a   :  { %v2175_v48 = vsub.f32 %v5454_v1, %v2174_v28 }
 0x91b   :  { %v2218_v16 = vand.u32 4294901760, %v2217_v47  ;;  %v5389_v5 = vpack.c.bf16 %v2239_v56, %v2232_v55  ;;  %v2147_v32 = vsub.f32 %v5417_v52, %v2146_v34  ;;  %v5459_v56 = vsub.f32 %v5207_v42, %v2050_v37 }
 0x91c   :  { %3999 = vmatpush3.bf16.msra.mxu1 %v5322_v4  ;;  %v2168_v42 = vsub.f32 %v5434_v45, %v2167_v12 }
 0x91d   :  { %4001 = vmatprep.subr.bf16.mxu1 %v5332_v29  ;;  %v5387_v54 = vpack.c.bf16 %v2225_v15, %v2218_v16  ;;  %v2153_v16 = vand.u32 4294901760, %v5422_v27  ;;  %v5429_v15 = vsub.f32 %v5184_v10, %v2041_v57  ;;  %v2181_v37 = vand.u32 4294901760, %v5459_v56 }
 0x91e   :  { %v2169_v36 = vand.u32 4294901760, %v2168_v42 }
 0x91f   :  { %v2154_v10 = vsub.f32 %v5422_v27, %v2153_v16  ;;  %v2160_v57 = vand.u32 4294901760, %v5429_v15  ;;  %v2182_v60 = vsub.f32 %v5459_v56, %v2181_v37  ;;  %v4108_v31 = vpack.c.bf16 %v2181_v37, %v2174_v28 }
 0x921   :  { %v4104_v13 = vpack.c.bf16 %v2167_v12, %v2160_v57 }
 0x9e6   :  { %v3469_v62 = vpop.f32.mrb[0].mxu0 }
 0x9e7   :  { %v4170_v44 = vadd.f32 %v3469_v62, %v2772_v20  ;;  %v1993_v35 = vpop.f32.mrb[1].mxu0 }
 0x9e8   :  { %v4171_v47 = vadd.f32 %v2772_v20, %v1993_v35  ;;  %v2148_v35 = vand.u32 4294901760, %v2147_v32 }
 0x9e9   :  { %v2004_v33 = vmax.f32 %v4170_v44, 0.0 }
 0x9ea   :  { %v2003_v61 = vmax.f32 %v4171_v47, 0.0  ;;  %v2155_v47 = vand.u32 4294901760, %v2154_v10 }
 0x9eb   :  { %v5436_v39 = vand.u32 4294901760, %v2004_v33 }
 0x9ec   :  { %v5438_v49 = vand.u32 4294901760, %v2003_v61  ;;  %v4004_v10 = vpack.c.bf16 %v2155_v47, %v2148_v35  ;;  %v2176_v35 = vand.u32 4294901760, %v2175_v48  ;;  %v2183_v47 = vand.u32 4294901760, %v2182_v60 }
 0x9ed   :  { %v5448_v55 = vsub.f32 %v2004_v33, %v5436_v39  ;;  %v2161_v33 = vsub.f32 %v5429_v15, %v2160_v57  ;;  %v4040_v60 = vpack.c.bf16 %v5434_v45, %v5429_v15  ;;  %v4096_v48 = vpack.c.bf16 %v2139_v0, %v2132_v58 }
 0x9ee   :  { %v5462_v20 = vsub.f32 %v2003_v61, %v5438_v49  ;;  %v4112_v58 = vpack.c.bf16 %v2195_v7, %v2188_v14  ;;  %v5622_v0 = vand.u32 4294901760, %v5349_v17  ;;  %v4124_v14 = vpack.c.bf16 %v5626_v22, %v5625_v21 }
 0x9ef   :  { %v2121_v62 = vand.u32 4294901760, %v5448_v55  ;;  %v2162_v19 = vand.u32 4294901760, %v2161_v33  ;;  %v4012_v33 = vpack.c.bf16 %v2183_v47, %v2176_v35 }
 0x9f0   :  { %v2111_v44 = vand.u32 4294901760, %v5462_v20 }
 0x9f1   :  { %v2122_v9 = vsub.f32 %v5448_v55, %v2121_v62 }
 0x9f2   :  { %v2112_v61 = vsub.f32 %v5462_v20, %v2111_v44 }
 0x9f3   :  { %v2123_v46 = vand.u32 4294901760, %v2122_v9 }
 0x9f4   :  { %v2113_v32 = vand.u32 4294901760, %v2112_v61  ;;  %v4008_v61 = vpack.c.bf16 %v2169_v36, %v2162_v19  ;;  %v4100_v36 = vpack.c.bf16 %v2153_v16, %v2146_v34  ;;  %v5624_v19 = vand.u32 4294901760, %v5363_v30 }
 0x9f6   :  { %3502 = vmatprep.mubr.f32.mxu1 %v2113_v32 }
 0x9f7   :  { %3503 = vmatmul.mubr.f32.vlgmr.msra.gmra.mrb[0].mxu1 %v2123_v46  ;;  %v5623_v46 = vand.u32 4294901760, %v5361_v25 }
 0x9f8   :  { %4003 = vmatpush3.bf16.msra.mxu1 %v5332_v29  ;;  %3537 = vmatprep.mubr.f32.mxu1 %v5438_v49  ;;  %v4036_v29 = vpack.c.bf16 %v5422_v27, %v5417_v52 }
 0x9f9   :  { %4005 = vmatprep.subr.bf16.mxu1 %v4004_v10 }
 0x9fc   :  { %4007 = vmatpush3.bf16.msra.mxu1 %v4004_v10 }
 0x9fd   :  { %4009 = vmatprep.subr.bf16.mxu1 %v4008_v61 }
 0xa00   :  { %4011 = vmatpush3.bf16.msra.mxu1 %v4008_v61 }
 0xa01   :  { %4013 = vmatprep.subr.bf16.mxu1 %v4012_v33 }
 0xa04   :  { %4015 = vmatpush3.bf16.msra.mxu1 %v4012_v33 }
 0xa05   :  { %4017 = vmatprep.subr.bf16.mxu1 %v5353_v38 }
 0xa08   :  { %4019 = vmatpush3.bf16.msra.mxu1 %v5353_v38  ;;  %v4044_v38 = vpack.c.bf16 %v5459_v56, %v5454_v1 }
 0xa09   :  { %4021 = vmatprep.subr.bf16.mxu1 %v5367_v40 }
 0xa0c   :  { %4023 = vmatpush3.bf16.msra.mxu1 %v5367_v40  ;;  %v4116_v40 = vpack.c.bf16 %v5622_v0, %v2202_v51 }
 0xa0d   :  { %4025 = vmatprep.subr.bf16.mxu1 %v5387_v54 }
 0xa10   :  { %4027 = vmatpush3.bf16.msra.mxu1 %v5387_v54  ;;  %v4120_v54 = vpack.c.bf16 %v5624_v19, %v5623_v46 }
 0xa11   :  { %4029 = vmatprep.subr.bf16.mxu1 %v5389_v5 }
 0xa14   :  { %4031 = vmatpush3.bf16.msra.mxu1 %v5389_v5 }
 0xa15   :  { %4033 = vmatprep.subr.bf16.mxu1 %v5393_v8 }
 0xa17   :  { %3538 = vmatmul.mubr.f32.vlgmr.msra.gmra.mrb[0].mxu1 %v5436_v39 }
 0xa18   :  { %4035 = vmatpush3.bf16.msra.mxu1 %v5393_v8  ;;  %3572 = vmatprep.mubr.f32.mxu1 %v5462_v20 }
 0xa19   :  { %4037 = vmatprep.subr.bf16.mxu1 %v4036_v29 }
 0xa1c   :  { %4039 = vmatpush3.bf16.msra.mxu1 %v4036_v29 }
 0xa1d   :  { %4041 = vmatprep.subr.bf16.mxu1 %v4040_v60 }
 0xa20   :  { %4043 = vmatpush3.bf16.msra.mxu1 %v4040_v60 }
 0xa21   :  { %4045 = vmatprep.subr.bf16.mxu1 %v4044_v38 }
 0xa24   :  { %4047 = vmatpush3.bf16.msra.mxu1 %v4044_v38 }
 0xa25   :  { %4049 = vmatprep.subr.bf16.mxu1 %v5397_v2 }
 0xa28   :  { %4051 = vmatpush3.bf16.msra.mxu1 %v5397_v2 }
 0xa29   :  { %4053 = vmatprep.subr.bf16.mxu1 %v5401_v6 }
 0xa2c   :  { %4055 = vmatpush3.bf16.msra.mxu1 %v5401_v6 }
 0xa2d   :  { %4057 = vmatprep.subr.bf16.mxu1 %v5405_v23 }
 0xa30   :  { %4059 = vmatpush3.bf16.msra.mxu1 %v5405_v23 }
 0xa31   :  { %4061 = vmatprep.subr.bf16.mxu1 %v5409_v41 }
 0xa34   :  { %4063 = vmatpush3.bf16.msra.mxu1 %v5409_v41 }
 0xa35   :  { %4065 = vmatprep.subr.bf16.mxu1 %v5195_v43 }
 0xa37   :  { %3573 = vmatmul.mubr.f32.vlgmr.msra.gmra.mrb[0].mxu1 %v5448_v55 }
 0xa38   :  { %4067 = vmatpush3.bf16.msra.mxu1 %v5195_v43  ;;  %3607 = vmatprep.mubr.f32.mxu1 %v2111_v44 }
 0xa39   :  { %4069 = vmatprep.subr.bf16.mxu1 %v5203_v59 }
 0xa3c   :  { %4071 = vmatpush3.bf16.msra.mxu1 %v5203_v59 }
 0xa3d   :  { %4073 = vmatprep.subr.bf16.mxu1 %v5218_v11 }
 0xa40   :  { %4075 = vmatpush3.bf16.msra.mxu1 %v5218_v11 }
 0xa41   :  { %4077 = vmatprep.subr.bf16.mxu1 %v5230_v24 }
 0xa44   :  { %4079 = vmatpush3.bf16.msra.mxu1 %v5230_v24 }
 0xa45   :  { %4081 = vmatprep.subr.bf16.mxu1 %v5298_v53 }
 0xa48   :  { %4083 = vmatpush3.bf16.msra.mxu1 %v5298_v53 }
 0xa49   :  { %4085 = vmatprep.subr.bf16.mxu1 %v5302_v18 }
 0xa4c   :  { %4087 = vmatpush3.bf16.msra.mxu1 %v5302_v18 }
 0xa4d   :  { %4089 = vmatprep.subr.bf16.mxu1 %v5306_v50 }
 0xa50   :  { %4091 = vmatpush3.bf16.msra.mxu1 %v5306_v50 }
 0xa51   :  { %4093 = vmatprep.subr.bf16.mxu1 %v5322_v4 }
 0xa54   :  { %4095 = vmatpush3.bf16.msra.mxu1 %v5322_v4 }
 0xa55   :  { %4097 = vmatprep.subr.bf16.mxu1 %v4096_v48 }
 0xa57   :  { %3608 = vmatmul.mubr.f32.vlgmr.msra.gmra.mrb[0].mxu1 %v2121_v62 }
 0xa58   :  { %4099 = vmatpush3.bf16.msra.mxu1 %v4096_v48  ;;  %3642 = vmatprep.mubr.f32.mxu1 %v5438_v49 }
 0xa59   :  { %4101 = vmatprep.subr.bf16.mxu1 %v4100_v36 }
 0xa5c   :  { %4103 = vmatpush3.bf16.msra.mxu1 %v4100_v36 }
 0xa5d   :  { %4105 = vmatprep.subr.bf16.mxu1 %v4104_v13 }
 0xa60   :  { %4107 = vmatpush3.bf16.msra.mxu1 %v4104_v13 }
 0xa61   :  { %4109 = vmatprep.subr.bf16.mxu1 %v4108_v31 }
 0xa64   :  { %4111 = vmatpush3.bf16.msra.mxu1 %v4108_v31 }
 0xa65   :  { %4113 = vmatprep.subr.bf16.mxu1 %v4112_v58 }
 0xa68   :  { %4115 = vmatpush3.bf16.msra.mxu1 %v4112_v58 }
 0xa69   :  { %4117 = vmatprep.subr.bf16.mxu1 %v4116_v40 }
 0xa6c   :  { %4119 = vmatpush3.bf16.msra.mxu1 %v4116_v40 }
 0xa6d   :  { %4121 = vmatprep.subr.bf16.mxu1 %v4120_v54 }
 0xa70   :  { %4123 = vmatpush3.bf16.msra.mxu1 %v4120_v54 }
 0xa71   :  { %4125 = vmatprep.subr.bf16.mxu1 %v4124_v14 }
 0xa74   :  { %4127 = vmatpush3.bf16.msra.mxu1 %v4124_v14 }
 0xa75   :  { %4129 = vmatprep.subr.bf16.mxu1 %v5195_v43 }
 0xa77   :  { %3643 = vmatmul.mubr.f32.vlgmr.msra.gmra.mrb[0].mxu1 %v5436_v39 }
 0xa78   :  { %4131 = vmatpush3.bf16.msra.mxu1 %v5195_v43  ;;  %3677 = vmatprep.mubr.f32.mxu1 %v5438_v49  ;;  %v2773_v43 = vld [vmem:[%s5611_s10] ss:$0 sm:$0xff] }
 0xa79   :  { %4133 = vmatprep.subr.bf16.mxu1 %v5203_v59 }
 0xa7c   :  { %4135 = vmatpush3.bf16.msra.mxu1 %v5203_v59 }
 0xa7d   :  { %4137 = vmatprep.subr.bf16.mxu1 %v5218_v11 }
 0xa80   :  { %4139 = vmatpush3.bf16.msra.mxu1 %v5218_v11 }
 0xa81   :  { %4141 = vmatprep.subr.bf16.mxu1 %v5230_v24 }
 0xa84   :  { %4143 = vmatpush3.bf16.msra.mxu1 %v5230_v24 }
 0xa85   :  { %4145 = vmatprep.subr.bf16.mxu1 %v5298_v53 }
 0xa88   :  { %4147 = vmatpush3.bf16.msra.mxu1 %v5298_v53 }
 0xa89   :  { %4149 = vmatprep.subr.bf16.mxu1 %v5302_v18 }
 0xa8c   :  { %4151 = vmatpush3.bf16.msra.mxu1 %v5302_v18 }
 0xa8d   :  { %4153 = vmatprep.subr.bf16.mxu1 %v5306_v50 }
 0xa90   :  { %4155 = vmatpush3.bf16.msra.mxu1 %v5306_v50 }
 0xa91   :  { %4157 = vmatprep.subr.bf16.mxu1 %v5322_v4 }
 0xa94   :  { %4159 = vmatpush3.bf16.msra.mxu1 %v5322_v4 }
 0xa97   :  { %3678 = vmatmul.mubr.f32.vlgmr.msra.gmra.mrb[0].mxu1 %v5436_v39 }
 0xb6a   :  { %v3679_v59 = vpop.f32.mrb[0].mxu1 }
 0xb6b   :  { %v4172_v11 = vadd.f32 %v3679_v59, %v2773_v43  ;;  %v2702_v24 = vpop.f32.mrb[1].mxu1 }
 0xb6c   :  { %v4173_v53 = vadd.f32 %v2773_v43, %v2702_v24 }
 0xb6d   :  { %2713 = vst [vmem:[#allocation13 + $0x8] sm:$0xff] %v4172_v11 }
 0xb6e   :  { %2712 = vst [vmem:[#allocation13] sm:$0xff] %v4173_v53 }
 0xb6f   :  { %4392 = shalt.err (!%p4389_p8)
}
 0xb70   :  { %s4393_s10 = scalar_lea.hbm %s5612_s11, 256 }
 0xb71   :  { %p4394_p9 = scmp.ne.s32.totalorder %s5612_s11, %s4393_s10  ;;  %p4397_p10 = scmp.lt.u32.totalorder %s4393_s10, %s5612_s11 }
 0xb73   :  { %p4399_p11 = pnand %p4397_p10, %p4394_p9 }
 0xb75   :  { %4402 = shalt.err (!%p4399_p11)
}
 0xb76   :  { %2725 = dma.vmem_to_hbm [thread:$0]  %s2720_s19, 256, %s5612_s11, [#allocation4], %s4455_s29, %s4455_s29, %s4456_s30  }
 0xb77   :  { %4431 = dma.done.wait [#allocation4], 256  }
 0xb78   :  { %4432 = vsyncadd [#allocation4], 4294967040 }
 0xb79   :  { %2729 = vsyncpa [#allocation3], 1 }
 0xb7a   :  { %2730 = vsyncpa [#allocation8], 1 }
 0xb7b   :  { %2731 = vsyncpa [#allocation11], 1 }
 0xb7c   :  { %2732 = vsyncpa [#allocation4], 1 }
 0xb7d   :  { %2733 = vsyncpa [#allocation5], 1 }

</bundles_post_ra>
